<compile_context>
chip_gen: v6e
topology: v6e:2x2x1
jax: 0.10.0
libtpu: 0.0.40
codegen_flags: <defaults>
</compile_context>

<pallas_src>
import functools

import jax
import jax.numpy as jnp
from jax.experimental import pallas as pl
from jax.experimental.pallas import tpu as pltpu

KSIZE = 5
STRIDE = 2
BN_EPS = 1e-5
TM = 512        # M-tile for the conv matmuls (multiple of 8); raise on v6e (128 MiB VMEM) if desired
K1_PAD = 128    # conv1 K (= 5*5*3 = 75) zero-padded up to one full lane width


def _conv_out(size):
    return (size - (KSIZE - 1) - 1) // STRIDE + 1


def _im2col(x_nhwc):
    """(N,H,W,C) -> (N*OH*OW, KSIZE*KSIZE*C) patches, inner order (kh, kw, c)."""
    N, H, W, C = x_nhwc.shape
    OH, OW = _conv_out(H), _conv_out(W)
    cols = []
    for kh in range(KSIZE):
        for kw in range(KSIZE):
            cols.append(jax.lax.slice(
                x_nhwc,
                (0, kh, kw, 0),
                (N, kh + STRIDE * (OH - 1) + 1, kw + STRIDE * (OW - 1) + 1, C),
                (1, STRIDE, STRIDE, 1)))                      # (N, OH, OW, C)
    patches = jnp.stack(cols, axis=3)                         # (N, OH, OW, K*K, C)
    return patches.reshape(N * OH * OW, KSIZE * KSIZE * C), (N, OH, OW)


# ---------------- Pallas kernels ----------------

def _conv_bias_relu_kernel(p_ref, w_ref, b_ref, o_ref):
    # conv as matmul over im2col patches (bf16 MXU, f32 accumulate); folded-BN bias + ReLU in f32.
    acc = jnp.dot(p_ref[...], w_ref[...], preferred_element_type=jnp.float32)
    o_ref[...] = jnp.maximum(acc + b_ref[...], 0.0).astype(o_ref.dtype)


def _conv3_head_kernel(P3, p_ref, w3_ref, b3_ref, wh_ref, bh_ref, o_ref):
    # Fused conv3 + BN + ReLU + Linear head for one tile of TB batch rows.
    #   p_ref : (TB, P3, K3) bf16 patches, wh_ref : (P3, C, outputs) bf16 head weights.
    # The head contribution of each spatial position p is accumulated directly, so no
    # in-kernel flatten/reshape of the conv3 activation is needed.
    acc = jnp.zeros(o_ref.shape, jnp.float32)
    for p in range(P3):  # static, fully unrolled (P3 is tiny for DQN-sized inputs)
        y = jnp.dot(p_ref[:, p, :], w3_ref[...], preferred_element_type=jnp.float32)
        y = jnp.maximum(y + b3_ref[...], 0.0).astype(wh_ref.dtype)
        acc = acc + jnp.dot(y, wh_ref[p], preferred_element_type=jnp.float32)
    o_ref[...] = acc + bh_ref[...]


def _conv_bias_relu(patches, w, bias, out_dtype):
    M, K = patches.shape
    Cout = w.shape[1]
    tm = min(TM, M)
    return pl.pallas_call(
        _conv_bias_relu_kernel,
        out_shape=jax.ShapeDtypeStruct((M, Cout), out_dtype),
        grid=(pl.cdiv(M, tm),),
        in_specs=[pl.BlockSpec((tm, K), lambda i: (i, 0)),
                  pl.BlockSpec((K, Cout), lambda i: (0, 0)),
                  pl.BlockSpec((1, Cout), lambda i: (0, 0))],
        out_specs=pl.BlockSpec((tm, Cout), lambda i: (i, 0)),
        compiler_params=pltpu.CompilerParams(
            dimension_semantics=("parallel",)),
    )(patches, w, bias)


def _conv3_head(patches3, w3, b3, wh3, bh):
    N, P3, K3 = patches3.shape
    C = w3.shape[1]
    outputs = wh3.shape[2]
    tb = N if N <= 8 else 8
    kernel = functools.partial(_conv3_head_kernel, P3)
    return pl.pallas_call(
        kernel,
        out_shape=jax.ShapeDtypeStruct((N, outputs), jnp.float32),
        grid=(pl.cdiv(N, tb),),
        in_specs=[pl.BlockSpec((tb, P3, K3), lambda i: (i, 0, 0)),
                  pl.BlockSpec((K3, C), lambda i: (0, 0)),
                  pl.BlockSpec((1, C), lambda i: (0, 0)),
                  pl.BlockSpec((P3, C, outputs), lambda i: (0, 0, 0)),
                  pl.BlockSpec((1, outputs), lambda i: (0, 0))],
        out_specs=pl.BlockSpec((tb, outputs), lambda i: (i, 0)),
        compiler_params=pltpu.CompilerParams(
            dimension_semantics=("parallel",)),
    )(patches3, w3, b3, wh3, bh)


# ---------------- parameters, folding & forward ----------------

def init_params(key, h, w, outputs):
    convh = _conv_out(_conv_out(_conv_out(h)))
    convw = _conv_out(_conv_out(_conv_out(w)))
    lin_in = convh * convw * 32
    ks = jax.random.split(key, 8)

    def conv_w(k, cin, cout):
        fan_in = KSIZE * KSIZE * cin
        # layout (KH, KW, Cin, Cout), matching the im2col patch ordering
        return jax.random.normal(k, (KSIZE, KSIZE, cin, cout), jnp.float32) / jnp.sqrt(fan_in)

    params = {
        'w1': conv_w(ks[0], 3, 16),
        'b1': 0.01 * jax.random.normal(ks[1], (16,), jnp.float32),
        'w2': conv_w(ks[2], 16, 32),
        'b2': 0.01 * jax.random.normal(ks[3], (32,), jnp.float32),
        'w3': conv_w(ks[4], 32, 32),
        'b3': 0.01 * jax.random.normal(ks[5], (32,), jnp.float32),
        'wh': jax.random.normal(ks[6], (lin_in, outputs), jnp.float32) / jnp.sqrt(lin_in),
        'bh': 0.01 * jax.random.normal(ks[7], (outputs,), jnp.float32),
    }
    # BatchNorm (eval-mode) parameters, deterministic defaults
    for i, c in zip((1, 2, 3), (16, 32, 32)):
        params[f'gamma{i}'] = jnp.ones((c,), jnp.float32)
        params[f'beta{i}'] = jnp.zeros((c,), jnp.float32)
        params[f'mean{i}'] = jnp.zeros((c,), jnp.float32)
        params[f'var{i}'] = jnp.ones((c,), jnp.float32)
    return params


def fold_params(params, h, w):
    """One-time constant folding per parameter set: BN scale into conv weights, head-weight
    row permutation into (H, W, C) flatten order, conv1 K padding, bf16 cast of MXU operands."""
    folded = {}
    for i in (1, 2, 3):
        wi = params[f'w{i}']
        kh, kw, cin, cout = wi.shape
        scale = params[f'gamma{i}'] / jnp.sqrt(params[f'var{i}'] + BN_EPS)
        bias = (params[f'b{i}'] - params[f'mean{i}']) * scale + params[f'beta{i}']
        w2d = wi.reshape(kh * kw * cin, cout) * scale[None, :]
        if i == 1:
            w2d = jnp.pad(w2d, ((0, K1_PAD - w2d.shape[0]), (0, 0)))
        folded[f'w{i}'] = w2d.astype(jnp.bfloat16)
        folded[f'b{i}'] = bias.reshape(1, cout).astype(jnp.float32)

    oh3 = _conv_out(_conv_out(_conv_out(h)))
    ow3 = _conv_out(_conv_out(_conv_out(w)))
    outputs = params['wh'].shape[1]
    # PyTorch's x.view(N, -1) flattens NCHW in (C, H, W) order; reorder the head-weight rows to
    # the (H, W, C) order produced by the NHWC conv pipeline, grouped per spatial position.
    wh = params['wh'].reshape(32, oh3, ow3, outputs).transpose(1, 2, 0, 3)
    folded['wh3'] = wh.reshape(oh3 * ow3, 32, outputs).astype(jnp.bfloat16)
    folded['bh'] = params['bh'].reshape(1, outputs).astype(jnp.float32)
    return folded


def dqn_forward(folded, x_nchw):
    x = jnp.transpose(x_nchw, (0, 2, 3, 1)).astype(jnp.bfloat16)   # NCHW -> NHWC, bf16 MXU inputs
    # conv1 + BN + ReLU
    patches, (N, OH, OW) = _im2col(x)
    patches = jnp.pad(patches, ((0, 0), (0, K1_PAD - patches.shape[1])))
    x = _conv_bias_relu(patches, folded['w1'], folded['b1'],
                        jnp.bfloat16).reshape(N, OH, OW, 16)
    # conv2 + BN + ReLU
    patches, (N, OH, OW) = _im2col(x)
    x = _conv_bias_relu(patches, folded['w2'], folded['b2'],
                        jnp.bfloat16).reshape(N, OH, OW, 32)
    # conv3 + BN + ReLU + Linear head, fused in a single Pallas kernel
    patches, (N, OH, OW) = _im2col(x)
    patches3 = patches.reshape(N, OH * OW, patches.shape[1])
    return _conv3_head(patches3, folded['w3'], folded['b3'],
                       folded['wh3'], folded['bh'])


def _reference(params, x_nchw):
    """Pure-JAX f32 reference (XLA conv) for sanity checking."""
    x = x_nchw.astype(jnp.float32)
    for i in (1, 2, 3):
        y = jax.lax.conv_general_dilated(
            x, params[f'w{i}'], window_strides=(STRIDE, STRIDE), padding='VALID',
            dimension_numbers=('NCHW', 'HWIO', 'NCHW'),
            precision=jax.lax.Precision.HIGHEST)
        b = params[f'b{i}'][None, :, None, None]
        s = (params[f'gamma{i}'] / jnp.sqrt(params[f'var{i}'] + BN_EPS))[None, :, None, None]
        m = params[f'mean{i}'][None, :, None, None]
        beta = params[f'beta{i}'][None, :, None, None]
        x = jnp.maximum((y + b - m) * s + beta, 0.0)
    flat = x.reshape(x.shape[0], -1)
    return jnp.dot(flat, params['wh'],
                   precision=jax.lax.Precision.HIGHEST) + params['bh'][None, :]


if __name__ == "__main__":
    B, H, W, OUTPUTS = 2, 32, 32, 2          # DQN(h=32, w=32, outputs=2)
    key = jax.random.PRNGKey(0)
    k_x, k_p = jax.random.split(key)
    x = jax.random.normal(k_x, (B, 3, H, W), jnp.float32)   # NCHW, like PyTorch
    params = init_params(k_p, H, W, OUTPUTS)
    folded = fold_params(params, H, W)       # constant folding, once per parameter set

    out = jax.jit(dqn_forward)(folded, x)
    out = jax.block_until_ready(out)
    assert out.shape == (B, OUTPUTS), out.shape

    ref = jax.block_until_ready(_reference(params, x))
    assert jnp.allclose(out, ref, atol=5e-2, rtol=5e-2), (out, ref)

    print("KERNEL_OK")
</pallas_src>

<mosaic_0001>
module attributes {stable_mosaic.version = 11 : i64} {
  func.func @_conv_bias_relu_kernel(%arg0: i32, %arg1: memref<392x128xbf16, #tpu.memory_space<vmem>>, %arg2: memref<128x16xbf16, #tpu.memory_space<vmem>>, %arg3: memref<1x16xf32, #tpu.memory_space<vmem>>, %arg4: memref<392x16xbf16, #tpu.memory_space<vmem>>) attributes {dimension_semantics = [#tpu.dimension_semantics<parallel>], iteration_bounds = array<i64: 1>, scalar_prefetch = 0 : i64, scratch_operands = 0 : i64, tpu.core_type = #tpu.core_type<tc>, window_params = [{transform_indices = @transform_0, window_bounds = array<i64: 392, 128>}, {pipeline_mode = #tpu.pipeline_mode<synchronous>, transform_indices = @transform_1, window_bounds = array<i64: 128, 16>}, {pipeline_mode = #tpu.pipeline_mode<synchronous>, transform_indices = @transform_2, window_bounds = array<i64: 1, 16>}, {transform_indices = @transform_3, window_bounds = array<i64: 392, 16>}]} {
    %c0 = arith.constant 0 : index
    %c0_0 = arith.constant 0 : index
    %0 = vector.load %arg1[%c0, %c0_0] : memref<392x128xbf16, #tpu.memory_space<vmem>>, vector<392x128xbf16>
    %c0_1 = arith.constant 0 : index
    %c0_2 = arith.constant 0 : index
    %1 = vector.load %arg2[%c0_1, %c0_2] : memref<128x16xbf16, #tpu.memory_space<vmem>>, vector<128x16xbf16>
    %cst = arith.constant dense<0.000000e+00> : vector<392x16xf32>
    %2 = tpu.matmul %0, %1, %cst {dimension_numbers = #tpu.dot_dimension_numbers<[1], [0], [0], [1], [0, 0, 1, 1], [], []>} : vector<392x128xbf16>, vector<128x16xbf16>, vector<392x16xf32> -> vector<392x16xf32>
    %c0_3 = arith.constant 0 : index
    %c0_4 = arith.constant 0 : index
    %3 = vector.load %arg3[%c0_3, %c0_4] : memref<1x16xf32, #tpu.memory_space<vmem>>, vector<1x16xf32>
    %4 = vector.broadcast %3 : vector<1x16xf32> to vector<392x16xf32>
    %5 = arith.addf %2, %4 : vector<392x16xf32>
    %cst_5 = arith.constant 0.000000e+00 : f32
    %6 = vector.broadcast %cst_5 : f32 to vector<392x16xf32>
    %7 = arith.maximumf %5, %6 : vector<392x16xf32>
    %8 = arith.truncf %7 : vector<392x16xf32> to vector<392x16xbf16>
    %c0_6 = arith.constant 0 : index
    %c0_7 = arith.constant 0 : index
    %9 = vector.load %arg4[%c0_6, %c0_7] : memref<392x16xbf16, #tpu.memory_space<vmem>>, vector<392x16xbf16>
    tpu.vector_store %arg4[%c0_6, %c0_7], %8 {strides = array<i32>} : memref<392x16xbf16, #tpu.memory_space<vmem>>, vector<392x16xbf16>,
    return
  }
  func.func @transform_0(%arg0: i32) -> (i32, i32) {
    %c0_i32 = arith.constant 0 : i32
    %c0_i32_0 = arith.constant 0 : i32
    return %arg0, %c0_i32 : i32, i32
  }
  func.func @transform_1(%arg0: i32) -> (i32, i32) {
    %c0_i32 = arith.constant 0 : i32
    %c0_i32_0 = arith.constant 0 : i32
    %c0_i32_1 = arith.constant 0 : i32
    return %c0_i32, %c0_i32_0 : i32, i32
  }
  func.func @transform_2(%arg0: i32) -> (i32, i32) {
    %c0_i32 = arith.constant 0 : i32
    %c0_i32_0 = arith.constant 0 : i32
    %c0_i32_1 = arith.constant 0 : i32
    return %c0_i32, %c0_i32_0 : i32, i32
  }
  func.func @transform_3(%arg0: i32) -> (i32, i32) {
    %c0_i32 = arith.constant 0 : i32
    %c0_i32_0 = arith.constant 0 : i32
    return %arg0, %c0_i32 : i32, i32
  }
}

module attributes {stable_mosaic.version = 11 : i64} {
  func.func @_conv_bias_relu_kernel(%arg0: i32, %arg1: memref<50x400xbf16, #tpu.memory_space<vmem>>, %arg2: memref<400x32xbf16, #tpu.memory_space<vmem>>, %arg3: memref<1x32xf32, #tpu.memory_space<vmem>>, %arg4: memref<50x32xbf16, #tpu.memory_space<vmem>>) attributes {dimension_semantics = [#tpu.dimension_semantics<parallel>], iteration_bounds = array<i64: 1>, scalar_prefetch = 0 : i64, scratch_operands = 0 : i64, tpu.core_type = #tpu.core_type<tc>, window_params = [{transform_indices = @transform_0, window_bounds = array<i64: 50, 400>}, {pipeline_mode = #tpu.pipeline_mode<synchronous>, transform_indices = @transform_1, window_bounds = array<i64: 400, 32>}, {pipeline_mode = #tpu.pipeline_mode<synchronous>, transform_indices = @transform_2, window_bounds = array<i64: 1, 32>}, {transform_indices = @transform_3, window_bounds = array<i64: 50, 32>}]} {
    %c0 = arith.constant 0 : index
    %c0_0 = arith.constant 0 : index
    %0 = vector.load %arg1[%c0, %c0_0] : memref<50x400xbf16, #tpu.memory_space<vmem>>, vector<50x400xbf16>
    %c0_1 = arith.constant 0 : index
    %c0_2 = arith.constant 0 : index
    %1 = vector.load %arg2[%c0_1, %c0_2] : memref<400x32xbf16, #tpu.memory_space<vmem>>, vector<400x32xbf16>
    %cst = arith.constant dense<0.000000e+00> : vector<50x32xf32>
    %2 = tpu.matmul %0, %1, %cst {dimension_numbers = #tpu.dot_dimension_numbers<[1], [0], [0], [1], [0, 0, 1, 1], [], []>} : vector<50x400xbf16>, vector<400x32xbf16>, vector<50x32xf32> -> vector<50x32xf32>
    %c0_3 = arith.constant 0 : index
    %c0_4 = arith.constant 0 : index
    %3 = vector.load %arg3[%c0_3, %c0_4] : memref<1x32xf32, #tpu.memory_space<vmem>>, vector<1x32xf32>
    %4 = vector.broadcast %3 : vector<1x32xf32> to vector<50x32xf32>
    %5 = arith.addf %2, %4 : vector<50x32xf32>
    %cst_5 = arith.constant 0.000000e+00 : f32
    %6 = vector.broadcast %cst_5 : f32 to vector<50x32xf32>
    %7 = arith.maximumf %5, %6 : vector<50x32xf32>
    %8 = arith.truncf %7 : vector<50x32xf32> to vector<50x32xbf16>
    %c0_6 = arith.constant 0 : index
    %c0_7 = arith.constant 0 : index
    %9 = vector.load %arg4[%c0_6, %c0_7] : memref<50x32xbf16, #tpu.memory_space<vmem>>, vector<50x32xbf16>
    tpu.vector_store %arg4[%c0_6, %c0_7], %8 {strides = array<i32>} : memref<50x32xbf16, #tpu.memory_space<vmem>>, vector<50x32xbf16>,
    return
  }
  func.func @transform_0(%arg0: i32) -> (i32, i32) {
    %c0_i32 = arith.constant 0 : i32
    %c0_i32_0 = arith.constant 0 : i32
    return %arg0, %c0_i32 : i32, i32
  }
  func.func @transform_1(%arg0: i32) -> (i32, i32) {
    %c0_i32 = arith.constant 0 : i32
    %c0_i32_0 = arith.constant 0 : i32
    %c0_i32_1 = arith.constant 0 : i32
    return %c0_i32, %c0_i32_0 : i32, i32
  }
  func.func @transform_2(%arg0: i32) -> (i32, i32) {
    %c0_i32 = arith.constant 0 : i32
    %c0_i32_0 = arith.constant 0 : i32
    %c0_i32_1 = arith.constant 0 : i32
    return %c0_i32, %c0_i32_0 : i32, i32
  }
  func.func @transform_3(%arg0: i32) -> (i32, i32) {
    %c0_i32 = arith.constant 0 : i32
    %c0_i32_0 = arith.constant 0 : i32
    return %arg0, %c0_i32 : i32, i32
  }
}

module attributes {stable_mosaic.version = 11 : i64} {
  func.func @_conv3_head_kernel(%arg0: i32, %arg1: memref<2x1x800xbf16, #tpu.memory_space<vmem>>, %arg2: memref<800x32xbf16, #tpu.memory_space<vmem>>, %arg3: memref<1x32xf32, #tpu.memory_space<vmem>>, %arg4: memref<1x32x2xbf16, #tpu.memory_space<vmem>>, %arg5: memref<1x2xf32, #tpu.memory_space<vmem>>, %arg6: memref<2x2xf32, #tpu.memory_space<vmem>>) attributes {dimension_semantics = [#tpu.dimension_semantics<parallel>], iteration_bounds = array<i64: 1>, scalar_prefetch = 0 : i64, scratch_operands = 0 : i64, tpu.core_type = #tpu.core_type<tc>, window_params = [{transform_indices = @transform_0, window_bounds = array<i64: 2, 1, 800>}, {pipeline_mode = #tpu.pipeline_mode<synchronous>, transform_indices = @transform_1, window_bounds = array<i64: 800, 32>}, {pipeline_mode = #tpu.pipeline_mode<synchronous>, transform_indices = @transform_2, window_bounds = array<i64: 1, 32>}, {pipeline_mode = #tpu.pipeline_mode<synchronous>, transform_indices = @transform_3, window_bounds = array<i64: 1, 32, 2>}, {pipeline_mode = #tpu.pipeline_mode<synchronous>, transform_indices = @transform_4, window_bounds = array<i64: 1, 2>}, {transform_indices = @transform_5, window_bounds = array<i64: 2, 2>}]} {
    %cst = arith.constant 0.000000e+00 : f32
    %0 = vector.broadcast %cst : f32 to vector<2x2xf32>
    %c0 = arith.constant 0 : index
    %c0_0 = arith.constant 0 : index
    %c0_1 = arith.constant 0 : index
    %1 = vector.load %arg1[%c0, %c0_0, %c0_1] : memref<2x1x800xbf16, #tpu.memory_space<vmem>>, vector<2x1x800xbf16>
    %2 = vector.shape_cast %1 : vector<2x1x800xbf16> to vector<2x800xbf16>
    %c0_2 = arith.constant 0 : index
    %c0_3 = arith.constant 0 : index
    %3 = vector.load %arg2[%c0_2, %c0_3] : memref<800x32xbf16, #tpu.memory_space<vmem>>, vector<800x32xbf16>
    %cst_4 = arith.constant dense<0.000000e+00> : vector<2x32xf32>
    %4 = tpu.matmul %2, %3, %cst_4 {dimension_numbers = #tpu.dot_dimension_numbers<[1], [0], [0], [1], [0, 0, 1, 1], [], []>} : vector<2x800xbf16>, vector<800x32xbf16>, vector<2x32xf32> -> vector<2x32xf32>
    %c0_5 = arith.constant 0 : index
    %c0_6 = arith.constant 0 : index
    %5 = vector.load %arg3[%c0_5, %c0_6] : memref<1x32xf32, #tpu.memory_space<vmem>>, vector<1x32xf32>
    %6 = vector.broadcast %5 : vector<1x32xf32> to vector<2x32xf32>
    %7 = arith.addf %4, %6 : vector<2x32xf32>
    %cst_7 = arith.constant 0.000000e+00 : f32
    %8 = vector.broadcast %cst_7 : f32 to vector<2x32xf32>
    %9 = arith.maximumf %7, %8 : vector<2x32xf32>
    %10 = arith.truncf %9 : vector<2x32xf32> to vector<2x32xbf16>
    %c0_8 = arith.constant 0 : index
    %c0_9 = arith.constant 0 : index
    %c0_10 = arith.constant 0 : index
    %11 = vector.load %arg4[%c0_8, %c0_9, %c0_10] : memref<1x32x2xbf16, #tpu.memory_space<vmem>>, vector<1x32x2xbf16>
    %12 = vector.shape_cast %11 : vector<1x32x2xbf16> to vector<32x2xbf16>
    %cst_11 = arith.constant dense<0.000000e+00> : vector<2x2xf32>
    %13 = tpu.matmul %10, %12, %cst_11 {dimension_numbers = #tpu.dot_dimension_numbers<[1], [0], [0], [1], [0, 0, 1, 1], [], []>} : vector<2x32xbf16>, vector<32x2xbf16>, vector<2x2xf32> -> vector<2x2xf32>
    %14 = arith.addf %0, %13 : vector<2x2xf32>
    %c0_12 = arith.constant 0 : index
    %c0_13 = arith.constant 0 : index
    %15 = vector.load %arg5[%c0_12, %c0_13] : memref<1x2xf32, #tpu.memory_space<vmem>>, vector<1x2xf32>
    %16 = vector.broadcast %15 : vector<1x2xf32> to vector<2x2xf32>
    %17 = arith.addf %14, %16 : vector<2x2xf32>
    %c0_14 = arith.constant 0 : index
    %c0_15 = arith.constant 0 : index
    %18 = vector.load %arg6[%c0_14, %c0_15] : memref<2x2xf32, #tpu.memory_space<vmem>>, vector<2x2xf32>
    tpu.vector_store %arg6[%c0_14, %c0_15], %17 {strides = array<i32>} : memref<2x2xf32, #tpu.memory_space<vmem>>, vector<2x2xf32>,
    return
  }
  func.func @transform_0(%arg0: i32) -> (i32, i32, i32) {
    %c0_i32 = arith.constant 0 : i32
    %c0_i32_0 = arith.constant 0 : i32
    %c0_i32_1 = arith.constant 0 : i32
    return %arg0, %c0_i32, %c0_i32_0 : i32, i32, i32
  }
  func.func @transform_1(%arg0: i32) -> (i32, i32) {
    %c0_i32 = arith.constant 0 : i32
    %c0_i32_0 = arith.constant 0 : i32
    %c0_i32_1 = arith.constant 0 : i32
    return %c0_i32, %c0_i32_0 : i32, i32
  }
  func.func @transform_2(%arg0: i32) -> (i32, i32) {
    %c0_i32 = arith.constant 0 : i32
    %c0_i32_0 = arith.constant 0 : i32
    %c0_i32_1 = arith.constant 0 : i32
    return %c0_i32, %c0_i32_0 : i32, i32
  }
  func.func @transform_3(%arg0: i32) -> (i32, i32, i32) {
    %c0_i32 = arith.constant 0 : i32
    %c0_i32_0 = arith.constant 0 : i32
    %c0_i32_1 = arith.constant 0 : i32
    %c0_i32_2 = arith.constant 0 : i32
    return %c0_i32, %c0_i32_0, %c0_i32_1 : i32, i32, i32
  }
  func.func @transform_4(%arg0: i32) -> (i32, i32) {
    %c0_i32 = arith.constant 0 : i32
    %c0_i32_0 = arith.constant 0 : i32
    %c0_i32_1 = arith.constant 0 : i32
    return %c0_i32, %c0_i32_0 : i32, i32
  }
  func.func @transform_5(%arg0: i32) -> (i32, i32) {
    %c0_i32 = arith.constant 0 : i32
    %c0_i32_0 = arith.constant 0 : i32
    return %arg0, %c0_i32 : i32, i32
  }
}

</mosaic_0001>

<bundles_post_ra>
// kernel: dqn_forward.3
= control target key start
LH: loop header
LB: loop body
LE: loop exit
PB: predicated region body
PF: predicated region fallthrough
CT: control target
= control target key end

     0   :  { %v1147_v0 = vmov 0.0   ;;  %vm1148_vm0 = vmmov 0   ;;  %vm761_vm1 = vcmask 125952   ;;  %s1584_s1 = inlined_call_operand.vmem [shape: bf16[128,16], index: 1, kind: input, shape index: {}]   ;;  %s1585_s0 = inlined_call_operand.vmem [shape: bf16[392,128], index: 0, kind: input, shape index: {}]   ;;  %s1586_s2 = inlined_call_operand.vmem [shape: f32[1,16], index: 2, kind: input, shape index: {}]   ;;  %s1587_s3 = inlined_call_operand.vmem [shape: bf16[392,16], index: 3, kind: output, shape index: {}]  }
   0x1   :  { %980 = vmatprep.subr.bf16.mxu0 %v1147_v0  ;;  %v1114_v1 = vld [vmem:[%s1584_s1 + $0x38] sm:$0xff]   ;;  %1096 = vmatprep.subr.bf16.mxu1 %v1147_v0  ;;  %v1115_v2 = vld [vmem:[%s1584_s1 + $0x30] sm:$0xff]   ;;  %v1116_v3 = vld [vmem:[%s1584_s1 + $0x28] sm:$0xff]  }
   0x2   :  { %996 = vmatprep.mubr.msk.bf16.mxu0 %vm1148_vm0, %v1147_v0  ;;  %1048 = vmatprep.mubr.msk.bf16.mxu1 %vm1148_vm0, %v1147_v0  ;;  %v1117_v4 = vld [vmem:[%s1584_s1 + $0x20] sm:$0xff]   ;;  %v1118_v5 = vld [vmem:[%s1584_s1 + $0x18] sm:$0xff]   ;;  %v1119_v6 = vld [vmem:[%s1584_s1 + $0x10] sm:$0xff]  }
   0x3   :  { %981 = vmatpush3.bf16.msra.mxu0 %v1114_v1  ;;  %1104 = vmatpush3.bf16.msra.mxu1 %v1114_v1  ;;  %v1120_v7 = vld [vmem:[%s1584_s1 + $0x8] sm:$0xff]   ;;  %v1121_v8 = vld [vmem:[%s1584_s1] sm:$0xff]   ;;  %v1125_v12 = vld [vmem:[%s1585_s0 + $0x70] sm:$0xff]  }
   0x4   :  { %982 = vmatprep.subr.bf16.mxu0 %v1147_v0  ;;  %1097 = vmatprep.subr.bf16.mxu1 %v1147_v0  ;;  %v1122_v9 = vld [vmem:[%s1585_s0] sm:$0xff]   ;;  %v1123_v10 = vld [vmem:[%s1585_s0 + $0x68] sm:$0xff]   ;;  %v1126_v13 = vld [vmem:[%s1585_s0 + $0x10] sm:$0xff]  }
   0x5   :  { %v1124_v11 = vld [vmem:[%s1585_s0 + $0x8] sm:$0xff]   ;;  %v1127_v14 = vld [vmem:[%s1585_s0 + $0x78] sm:$0xff]   ;;  %v1129_v16 = vld [vmem:[%s1585_s0 + $0x80] sm:$0xff]  }
   0x6   :  { %v1128_v15 = vld [vmem:[%s1585_s0 + $0x18] sm:$0xff]   ;;  %v1130_v17 = vld [vmem:[%s1585_s0 + $0x20] sm:$0xff]   ;;  %v1131_v18 = vld [vmem:[%s1585_s0 + $0x88] sm:$0xff]  }
   0x7   :  { %983 = vmatpush3.bf16.msra.mxu0 %v1115_v2  ;;  %1105 = vmatpush3.bf16.msra.mxu1 %v1115_v2  ;;  %v1132_v19 = vld [vmem:[%s1585_s0 + $0x28] sm:$0xff]   ;;  %v1133_v20 = vld [vmem:[%s1585_s0 + $0x90] sm:$0xff]   ;;  %v1135_v22 = vld [vmem:[%s1585_s0 + $0x98] sm:$0xff]  }
   0x8   :  { %984 = vmatprep.subr.bf16.mxu0 %v1147_v0  ;;  %1098 = vmatprep.subr.bf16.mxu1 %v1147_v0  ;;  %v1134_v21 = vld [vmem:[%s1585_s0 + $0x30] sm:$0xff]   ;;  %v1136_v23 = vld [vmem:[%s1585_s0 + $0x38] sm:$0xff]   ;;  %v1137_v24 = vld [vmem:[%s1585_s0 + $0xa0] sm:$0xff]  }
   0x9   :  { %v1138_v25 = vld [vmem:[%s1585_s0 + $0x40] sm:$0xff]   ;;  %v1139_v26 = vld [vmem:[%s1585_s0 + $0xa8] sm:$0xff]   ;;  %v1141_v28 = vld [vmem:[%s1585_s0 + $0xb0] sm:$0xff]  }
   0xa   :  { %v1140_v27 = vld [vmem:[%s1585_s0 + $0x48] sm:$0xff]   ;;  %v1142_v29 = vld [vmem:[%s1585_s0 + $0x50] sm:$0xff]   ;;  %v1143_v30 = vld [vmem:[%s1585_s0 + $0xb8] sm:$0xff]  }
   0xb   :  { %985 = vmatpush3.bf16.msra.mxu0 %v1116_v3  ;;  %1106 = vmatpush3.bf16.msra.mxu1 %v1116_v3  ;;  %v1144_v31 = vld [vmem:[%s1585_s0 + $0x58] sm:$0xff]   ;;  %v1145_v32 = vld [vmem:[%s1585_s0 + $0xc0] ss:$0 sps:$4 sm:$0xff]  }
   0xc   :  { %986 = vmatprep.subr.bf16.mxu0 %v1147_v0  ;;  %1099 = vmatprep.subr.bf16.mxu1 %v1147_v0  ;;  %v1146_v33 = vld [vmem:[%s1585_s0 + $0x60] sm:$0xff]  }
   0xd   :  { %v1337_v34 = vld [vmem:[%s1586_s2] ss:$0 sm:$0xff] }
   0xf   :  { %987 = vmatpush3.bf16.msra.mxu0 %v1117_v4  ;;  %1107 = vmatpush3.bf16.msra.mxu1 %v1117_v4 }
  0x10   :  { %988 = vmatprep.subr.bf16.mxu0 %v1147_v0  ;;  %1100 = vmatprep.subr.bf16.mxu1 %v1147_v0 }
  0x13   :  { %989 = vmatpush3.bf16.msra.mxu0 %v1118_v5  ;;  %1108 = vmatpush3.bf16.msra.mxu1 %v1118_v5 }
  0x14   :  { %990 = vmatprep.subr.bf16.mxu0 %v1147_v0  ;;  %1101 = vmatprep.subr.bf16.mxu1 %v1147_v0 }
  0x17   :  { %991 = vmatpush3.bf16.msra.mxu0 %v1119_v6  ;;  %1109 = vmatpush3.bf16.msra.mxu1 %v1119_v6 }
  0x18   :  { %992 = vmatprep.subr.bf16.mxu0 %v1147_v0  ;;  %1102 = vmatprep.subr.bf16.mxu1 %v1147_v0 }
  0x1b   :  { %993 = vmatpush3.bf16.msra.mxu0 %v1120_v7  ;;  %1110 = vmatpush3.bf16.msra.mxu1 %v1120_v7 }
  0x1c   :  { %994 = vmatprep.subr.bf16.mxu0 %v1147_v0  ;;  %1103 = vmatprep.subr.bf16.mxu1 %v1147_v0 }
  0x1f   :  { %995 = vmatpush3.bf16.msra.mxu0 %v1121_v8  ;;  %1111 = vmatpush3.bf16.msra.mxu1 %v1121_v8 }
  0x22   :  { %997 = vmatmul.mubr.bf16.vlgmr.msra.gmra.mxu0 %v1122_v9  ;;  %1049 = vmatmul.mubr.bf16.vlgmr.msra.gmra.mxu1 %v1123_v10 }
  0x23   :  { %1000 = vmatprep.mubr.msk.bf16.mxu0 %vm1148_vm0, %v1147_v0  ;;  %1052 = vmatprep.mubr.msk.bf16.mxu1 %vm1148_vm0, %v1147_v0 }
  0x2a   :  { %1001 = vmatmul.mubr.bf16.gmra.mxu0 %v1124_v11  ;;  %1053 = vmatmul.mubr.bf16.gmra.mxu1 %v1125_v12 }
  0x2b   :  { %1004 = vmatprep.mubr.msk.bf16.mxu0 %vm1148_vm0, %v1147_v0  ;;  %1056 = vmatprep.mubr.msk.bf16.mxu1 %vm1148_vm0, %v1147_v0 }
  0x32   :  { %1005 = vmatmul.mubr.bf16.gmra.mxu0 %v1126_v13  ;;  %1057 = vmatmul.mubr.bf16.gmra.mxu1 %v1127_v14 }
  0x33   :  { %1008 = vmatprep.mubr.msk.bf16.mxu0 %vm1148_vm0, %v1147_v0  ;;  %1060 = vmatprep.mubr.msk.bf16.mxu1 %vm1148_vm0, %v1147_v0 }
  0x3a   :  { %1009 = vmatmul.mubr.bf16.gmra.mxu0 %v1128_v15  ;;  %1061 = vmatmul.mubr.bf16.gmra.mxu1 %v1129_v16 }
  0x3b   :  { %1012 = vmatprep.mubr.msk.bf16.mxu0 %vm1148_vm0, %v1147_v0  ;;  %1064 = vmatprep.mubr.msk.bf16.mxu1 %vm1148_vm0, %v1147_v0 }
  0x42   :  { %1013 = vmatmul.mubr.bf16.gmra.mxu0 %v1130_v17  ;;  %1065 = vmatmul.mubr.bf16.gmra.mxu1 %v1131_v18 }
  0x43   :  { %1016 = vmatprep.mubr.msk.bf16.mxu0 %vm1148_vm0, %v1147_v0  ;;  %1068 = vmatprep.mubr.msk.bf16.mxu1 %vm1148_vm0, %v1147_v0 }
  0x4a   :  { %1017 = vmatmul.mubr.bf16.gmra.mxu0 %v1132_v19  ;;  %1069 = vmatmul.mubr.bf16.gmra.mxu1 %v1133_v20 }
  0x4b   :  { %1020 = vmatprep.mubr.msk.bf16.mxu0 %vm1148_vm0, %v1147_v0  ;;  %1072 = vmatprep.mubr.msk.bf16.mxu1 %vm1148_vm0, %v1147_v0 }
  0x52   :  { %1021 = vmatmul.mubr.bf16.gmra.mxu0 %v1134_v21  ;;  %1073 = vmatmul.mubr.bf16.gmra.mxu1 %v1135_v22 }
  0x53   :  { %1024 = vmatprep.mubr.msk.bf16.mxu0 %vm1148_vm0, %v1147_v0  ;;  %1076 = vmatprep.mubr.msk.bf16.mxu1 %vm1148_vm0, %v1147_v0 }
  0x5a   :  { %1025 = vmatmul.mubr.bf16.gmra.mxu0 %v1136_v23  ;;  %1077 = vmatmul.mubr.bf16.gmra.mxu1 %v1137_v24 }
  0x5b   :  { %1028 = vmatprep.mubr.msk.bf16.mxu0 %vm1148_vm0, %v1147_v0  ;;  %1080 = vmatprep.mubr.msk.bf16.mxu1 %vm1148_vm0, %v1147_v0 }
  0x62   :  { %1029 = vmatmul.mubr.bf16.gmra.mxu0 %v1138_v25  ;;  %1081 = vmatmul.mubr.bf16.gmra.mxu1 %v1139_v26 }
  0x63   :  { %1032 = vmatprep.mubr.msk.bf16.mxu0 %vm1148_vm0, %v1147_v0  ;;  %1084 = vmatprep.mubr.msk.bf16.mxu1 %vm1148_vm0, %v1147_v0 }
  0x6a   :  { %1033 = vmatmul.mubr.bf16.gmra.mxu0 %v1140_v27  ;;  %1085 = vmatmul.mubr.bf16.gmra.mxu1 %v1141_v28 }
  0x6b   :  { %1036 = vmatprep.mubr.msk.bf16.mxu0 %vm1148_vm0, %v1147_v0  ;;  %1088 = vmatprep.mubr.msk.bf16.mxu1 %vm1148_vm0, %v1147_v0 }
  0x72   :  { %1037 = vmatmul.mubr.bf16.gmra.mxu0 %v1142_v29  ;;  %1089 = vmatmul.mubr.bf16.gmra.mxu1 %v1143_v30 }
  0x73   :  { %1040 = vmatprep.mubr.msk.bf16.mxu0 %vm1148_vm0, %v1147_v0  ;;  %1092 = vmatprep.mubr.msk.bf16.mxu1 %vm1148_vm0, %v1147_v0 }
  0x7a   :  { %1041 = vmatmul.mubr.bf16.gmra.mxu0 %v1144_v31  ;;  %1093 = vmatmul.mubr.bf16.gmra.mxu1 %v1145_v32 }
  0x7b   :  { %1044 = vmatprep.mubr.msk.bf16.mxu0 %vm1148_vm0, %v1147_v0 }
  0x82   :  { %1045 = vmatmul.mubr.bf16.gmra.mxu0 %v1146_v33 }
  0xe2   :  { %v317_v35 = vpop.f32.mrf.mxu0  ;;  %v421_v36 = vpop.f32.mrf.mxu1 }
  0xe3   :  { %v318_v37 = vadd.f32 %v1337_v34, %v317_v35  ;;  %v422_v38 = vadd.f32 %v1337_v34, %v421_v36 }
  0xe4   :  { %v998_v39 = vpop.f32.mrf.mxu0  ;;  %v1050_v40 = vpop.f32.mrf.mxu1 }
  0xe5   :  { %v515_v41 = vmax.f32 %v318_v37, 0.0  ;;  %v541_v42 = vmax.f32 %v422_v38, 0.0 }
  0xe6   :  { %v320_v43 = vpop.f32.mrf.mxu0  ;;  %v424_v44 = vpop.f32.mrf.mxu1 }
  0xe7   :  { %v898_v45 = vpack.c.bf16 %v515_v41, %v515_v41  ;;  %v321_v46 = vadd.f32 %v1337_v34, %v320_v43  ;;  %v924_v47 = vpack.c.bf16 %v541_v42, %v541_v42  ;;  %v425_v48 = vadd.f32 %v1337_v34, %v424_v44 }
  0xe8   :  { %v999_v49 = vpop.f32.mrf.mxu0  ;;  %v1051_v50 = vpop.f32.mrf.mxu1 }
  0xe9   :  { %762 = vst.msk [vmem:[%s1587_s3] sm:$0xf] %vm761_vm1, %v898_v45  ;;  %v516_v51 = vmax.f32 %v321_v46, 0.0  ;;  %788 = vst.msk [vmem:[%s1587_s3 + $0x68] sm:$0xf] %vm761_vm1, %v924_v47  ;;  %v542_v52 = vmax.f32 %v425_v48, 0.0 }
  0xea   :  { %v325_v53 = vpop.f32.mrf.mxu0  ;;  %v429_v54 = vpop.f32.mrf.mxu1 }
  0xeb   :  { %v899_v55 = vpack.c.bf16 %v516_v51, %v516_v51  ;;  %v326_v56 = vadd.f32 %v1337_v34, %v325_v53  ;;  %v925_v57 = vpack.c.bf16 %v542_v52, %v542_v52  ;;  %v430_v58 = vadd.f32 %v1337_v34, %v429_v54 }
  0xec   :  { %v1002_v59 = vpop.f32.mrf.mxu0  ;;  %v1054_v60 = vpop.f32.mrf.mxu1 }
  0xed   :  { %763 = vst.msk [vmem:[%s1587_s3 + $0x4] sm:$0xf] %vm761_vm1, %v899_v55  ;;  %v517_v61 = vmax.f32 %v326_v56, 0.0  ;;  %789 = vst.msk [vmem:[%s1587_s3 + $0x6c] sm:$0xf] %vm761_vm1, %v925_v57  ;;  %v543_v62 = vmax.f32 %v430_v58, 0.0 }
  0xee   :  { %v328_v63 = vpop.f32.mrf.mxu0  ;;  %v432_v0 = vpop.f32.mrf.mxu1 }
  0xef   :  { %v900_v1 = vpack.c.bf16 %v517_v61, %v517_v61  ;;  %v329_v2 = vadd.f32 %v1337_v34, %v328_v63  ;;  %v926_v3 = vpack.c.bf16 %v543_v62, %v543_v62  ;;  %v433_v4 = vadd.f32 %v1337_v34, %v432_v0 }
  0xf0   :  { %v1003_v5 = vpop.f32.mrf.mxu0  ;;  %v1055_v6 = vpop.f32.mrf.mxu1 }
  0xf1   :  { %764 = vst.msk [vmem:[%s1587_s3 + $0x8] sm:$0xf] %vm761_vm1, %v900_v1  ;;  %v518_v7 = vmax.f32 %v329_v2, 0.0  ;;  %790 = vst.msk [vmem:[%s1587_s3 + $0x70] sm:$0xf] %vm761_vm1, %v926_v3  ;;  %v544_v8 = vmax.f32 %v433_v4, 0.0 }
  0xf2   :  { %v333_v9 = vpop.f32.mrf.mxu0  ;;  %v437_v10 = vpop.f32.mrf.mxu1 }
  0xf3   :  { %v901_v11 = vpack.c.bf16 %v518_v7, %v518_v7  ;;  %v334_v12 = vadd.f32 %v1337_v34, %v333_v9  ;;  %v927_v13 = vpack.c.bf16 %v544_v8, %v544_v8  ;;  %v438_v14 = vadd.f32 %v1337_v34, %v437_v10 }
  0xf4   :  { %v1006_v15 = vpop.f32.mrf.mxu0  ;;  %v1058_v16 = vpop.f32.mrf.mxu1 }
  0xf5   :  { %765 = vst.msk [vmem:[%s1587_s3 + $0xc] sm:$0xf] %vm761_vm1, %v901_v11  ;;  %v519_v17 = vmax.f32 %v334_v12, 0.0  ;;  %791 = vst.msk [vmem:[%s1587_s3 + $0x74] sm:$0xf] %vm761_vm1, %v927_v13  ;;  %v545_v18 = vmax.f32 %v438_v14, 0.0 }
  0xf6   :  { %v336_v19 = vpop.f32.mrf.mxu0  ;;  %v440_v20 = vpop.f32.mrf.mxu1 }
  0xf7   :  { %v902_v21 = vpack.c.bf16 %v519_v17, %v519_v17  ;;  %v337_v22 = vadd.f32 %v1337_v34, %v336_v19  ;;  %v928_v23 = vpack.c.bf16 %v545_v18, %v545_v18  ;;  %v441_v24 = vadd.f32 %v1337_v34, %v440_v20 }
  0xf8   :  { %v1007_v25 = vpop.f32.mrf.mxu0  ;;  %v1059_v26 = vpop.f32.mrf.mxu1 }
  0xf9   :  { %766 = vst.msk [vmem:[%s1587_s3 + $0x10] sm:$0xf] %vm761_vm1, %v902_v21  ;;  %v520_v27 = vmax.f32 %v337_v22, 0.0  ;;  %792 = vst.msk [vmem:[%s1587_s3 + $0x78] sm:$0xf] %vm761_vm1, %v928_v23  ;;  %v546_v28 = vmax.f32 %v441_v24, 0.0 }
  0xfa   :  { %v341_v29 = vpop.f32.mrf.mxu0  ;;  %v445_v30 = vpop.f32.mrf.mxu1 }
  0xfb   :  { %v903_v31 = vpack.c.bf16 %v520_v27, %v520_v27  ;;  %v342_v32 = vadd.f32 %v1337_v34, %v341_v29  ;;  %v929_v33 = vpack.c.bf16 %v546_v28, %v546_v28  ;;  %v446_v35 = vadd.f32 %v1337_v34, %v445_v30 }
  0xfc   :  { %v1010_v36 = vpop.f32.mrf.mxu0  ;;  %v1062_v37 = vpop.f32.mrf.mxu1 }
  0xfd   :  { %767 = vst.msk [vmem:[%s1587_s3 + $0x14] sm:$0xf] %vm761_vm1, %v903_v31  ;;  %v521_v38 = vmax.f32 %v342_v32, 0.0  ;;  %793 = vst.msk [vmem:[%s1587_s3 + $0x7c] sm:$0xf] %vm761_vm1, %v929_v33  ;;  %v547_v39 = vmax.f32 %v446_v35, 0.0 }
  0xfe   :  { %v344_v40 = vpop.f32.mrf.mxu0  ;;  %v448_v41 = vpop.f32.mrf.mxu1 }
  0xff   :  { %v904_v42 = vpack.c.bf16 %v521_v38, %v521_v38  ;;  %v345_v43 = vadd.f32 %v1337_v34, %v344_v40  ;;  %v930_v44 = vpack.c.bf16 %v547_v39, %v547_v39  ;;  %v449_v45 = vadd.f32 %v1337_v34, %v448_v41 }
 0x100   :  { %v1011_v46 = vpop.f32.mrf.mxu0  ;;  %v1063_v47 = vpop.f32.mrf.mxu1 }
 0x101   :  { %768 = vst.msk [vmem:[%s1587_s3 + $0x18] sm:$0xf] %vm761_vm1, %v904_v42  ;;  %v522_v48 = vmax.f32 %v345_v43, 0.0  ;;  %794 = vst.msk [vmem:[%s1587_s3 + $0x80] sm:$0xf] %vm761_vm1, %v930_v44  ;;  %v548_v49 = vmax.f32 %v449_v45, 0.0 }
 0x102   :  { %v349_v50 = vpop.f32.mrf.mxu0  ;;  %v453_v51 = vpop.f32.mrf.mxu1 }
 0x103   :  { %v905_v52 = vpack.c.bf16 %v522_v48, %v522_v48  ;;  %v350_v53 = vadd.f32 %v1337_v34, %v349_v50  ;;  %v931_v54 = vpack.c.bf16 %v548_v49, %v548_v49  ;;  %v454_v55 = vadd.f32 %v1337_v34, %v453_v51 }
 0x104   :  { %v1014_v56 = vpop.f32.mrf.mxu0  ;;  %v1066_v57 = vpop.f32.mrf.mxu1 }
 0x105   :  { %769 = vst.msk [vmem:[%s1587_s3 + $0x1c] sm:$0xf] %vm761_vm1, %v905_v52  ;;  %v523_v58 = vmax.f32 %v350_v53, 0.0  ;;  %795 = vst.msk [vmem:[%s1587_s3 + $0x84] sm:$0xf] %vm761_vm1, %v931_v54  ;;  %v549_v59 = vmax.f32 %v454_v55, 0.0 }
 0x106   :  { %v352_v60 = vpop.f32.mrf.mxu0  ;;  %v456_v61 = vpop.f32.mrf.mxu1 }
 0x107   :  { %v906_v62 = vpack.c.bf16 %v523_v58, %v523_v58  ;;  %v353_v63 = vadd.f32 %v1337_v34, %v352_v60  ;;  %v932_v0 = vpack.c.bf16 %v549_v59, %v549_v59  ;;  %v457_v1 = vadd.f32 %v1337_v34, %v456_v61 }
 0x108   :  { %v1015_v2 = vpop.f32.mrf.mxu0  ;;  %v1067_v3 = vpop.f32.mrf.mxu1 }
 0x109   :  { %770 = vst.msk [vmem:[%s1587_s3 + $0x20] sm:$0xf] %vm761_vm1, %v906_v62  ;;  %v524_v4 = vmax.f32 %v353_v63, 0.0  ;;  %796 = vst.msk [vmem:[%s1587_s3 + $0x88] sm:$0xf] %vm761_vm1, %v932_v0  ;;  %v550_v5 = vmax.f32 %v457_v1, 0.0 }
 0x10a   :  { %v357_v6 = vpop.f32.mrf.mxu0  ;;  %v461_v7 = vpop.f32.mrf.mxu1 }
 0x10b   :  { %v907_v8 = vpack.c.bf16 %v524_v4, %v524_v4  ;;  %v358_v9 = vadd.f32 %v1337_v34, %v357_v6  ;;  %v933_v10 = vpack.c.bf16 %v550_v5, %v550_v5  ;;  %v462_v11 = vadd.f32 %v1337_v34, %v461_v7 }
 0x10c   :  { %v1018_v12 = vpop.f32.mrf.mxu0  ;;  %v1070_v13 = vpop.f32.mrf.mxu1 }
 0x10d   :  { %771 = vst.msk [vmem:[%s1587_s3 + $0x24] sm:$0xf] %vm761_vm1, %v907_v8  ;;  %v525_v14 = vmax.f32 %v358_v9, 0.0  ;;  %797 = vst.msk [vmem:[%s1587_s3 + $0x8c] sm:$0xf] %vm761_vm1, %v933_v10  ;;  %v551_v15 = vmax.f32 %v462_v11, 0.0 }
 0x10e   :  { %v360_v16 = vpop.f32.mrf.mxu0  ;;  %v464_v17 = vpop.f32.mrf.mxu1 }
 0x10f   :  { %v908_v18 = vpack.c.bf16 %v525_v14, %v525_v14  ;;  %v361_v19 = vadd.f32 %v1337_v34, %v360_v16  ;;  %v934_v20 = vpack.c.bf16 %v551_v15, %v551_v15  ;;  %v465_v21 = vadd.f32 %v1337_v34, %v464_v17 }
 0x110   :  { %v1019_v22 = vpop.f32.mrf.mxu0  ;;  %v1071_v23 = vpop.f32.mrf.mxu1 }
 0x111   :  { %772 = vst.msk [vmem:[%s1587_s3 + $0x28] sm:$0xf] %vm761_vm1, %v908_v18  ;;  %v526_v24 = vmax.f32 %v361_v19, 0.0  ;;  %798 = vst.msk [vmem:[%s1587_s3 + $0x90] sm:$0xf] %vm761_vm1, %v934_v20  ;;  %v552_v25 = vmax.f32 %v465_v21, 0.0 }
 0x112   :  { %v365_v26 = vpop.f32.mrf.mxu0  ;;  %v469_v27 = vpop.f32.mrf.mxu1 }
 0x113   :  { %v909_v28 = vpack.c.bf16 %v526_v24, %v526_v24  ;;  %v366_v29 = vadd.f32 %v1337_v34, %v365_v26  ;;  %v935_v30 = vpack.c.bf16 %v552_v25, %v552_v25  ;;  %v470_v31 = vadd.f32 %v1337_v34, %v469_v27 }
 0x114   :  { %v1022_v32 = vpop.f32.mrf.mxu0  ;;  %v1074_v33 = vpop.f32.mrf.mxu1 }
 0x115   :  { %773 = vst.msk [vmem:[%s1587_s3 + $0x2c] sm:$0xf] %vm761_vm1, %v909_v28  ;;  %v527_v35 = vmax.f32 %v366_v29, 0.0  ;;  %799 = vst.msk [vmem:[%s1587_s3 + $0x94] sm:$0xf] %vm761_vm1, %v935_v30  ;;  %v553_v36 = vmax.f32 %v470_v31, 0.0 }
 0x116   :  { %v368_v37 = vpop.f32.mrf.mxu0  ;;  %v472_v38 = vpop.f32.mrf.mxu1 }
 0x117   :  { %v910_v39 = vpack.c.bf16 %v527_v35, %v527_v35  ;;  %v369_v40 = vadd.f32 %v1337_v34, %v368_v37  ;;  %v936_v41 = vpack.c.bf16 %v553_v36, %v553_v36  ;;  %v473_v42 = vadd.f32 %v1337_v34, %v472_v38 }
 0x118   :  { %v1023_v43 = vpop.f32.mrf.mxu0  ;;  %v1075_v44 = vpop.f32.mrf.mxu1 }
 0x119   :  { %774 = vst.msk [vmem:[%s1587_s3 + $0x30] sm:$0xf] %vm761_vm1, %v910_v39  ;;  %v528_v45 = vmax.f32 %v369_v40, 0.0  ;;  %800 = vst.msk [vmem:[%s1587_s3 + $0x98] sm:$0xf] %vm761_vm1, %v936_v41  ;;  %v554_v46 = vmax.f32 %v473_v42, 0.0 }
 0x11a   :  { %v373_v47 = vpop.f32.mrf.mxu0  ;;  %v477_v48 = vpop.f32.mrf.mxu1 }
 0x11b   :  { %v911_v49 = vpack.c.bf16 %v528_v45, %v528_v45  ;;  %v374_v50 = vadd.f32 %v1337_v34, %v373_v47  ;;  %v937_v51 = vpack.c.bf16 %v554_v46, %v554_v46  ;;  %v478_v52 = vadd.f32 %v1337_v34, %v477_v48 }
 0x11c   :  { %v1026_v53 = vpop.f32.mrf.mxu0  ;;  %v1078_v54 = vpop.f32.mrf.mxu1 }
 0x11d   :  { %775 = vst.msk [vmem:[%s1587_s3 + $0x34] sm:$0xf] %vm761_vm1, %v911_v49  ;;  %v529_v55 = vmax.f32 %v374_v50, 0.0  ;;  %801 = vst.msk [vmem:[%s1587_s3 + $0x9c] sm:$0xf] %vm761_vm1, %v937_v51  ;;  %v555_v56 = vmax.f32 %v478_v52, 0.0 }
 0x11e   :  { %v376_v57 = vpop.f32.mrf.mxu0  ;;  %v480_v58 = vpop.f32.mrf.mxu1 }
 0x11f   :  { %v912_v59 = vpack.c.bf16 %v529_v55, %v529_v55  ;;  %v377_v60 = vadd.f32 %v1337_v34, %v376_v57  ;;  %v938_v61 = vpack.c.bf16 %v555_v56, %v555_v56  ;;  %v481_v62 = vadd.f32 %v1337_v34, %v480_v58 }
 0x120   :  { %v1027_v63 = vpop.f32.mrf.mxu0  ;;  %v1079_v0 = vpop.f32.mrf.mxu1 }
 0x121   :  { %776 = vst.msk [vmem:[%s1587_s3 + $0x38] sm:$0xf] %vm761_vm1, %v912_v59  ;;  %v530_v1 = vmax.f32 %v377_v60, 0.0  ;;  %802 = vst.msk [vmem:[%s1587_s3 + $0xa0] sm:$0xf] %vm761_vm1, %v938_v61  ;;  %v556_v2 = vmax.f32 %v481_v62, 0.0 }
 0x122   :  { %v381_v3 = vpop.f32.mrf.mxu0  ;;  %v485_v4 = vpop.f32.mrf.mxu1 }
 0x123   :  { %v913_v5 = vpack.c.bf16 %v530_v1, %v530_v1  ;;  %v382_v6 = vadd.f32 %v1337_v34, %v381_v3  ;;  %v939_v7 = vpack.c.bf16 %v556_v2, %v556_v2  ;;  %v486_v8 = vadd.f32 %v1337_v34, %v485_v4 }
 0x124   :  { %v1030_v9 = vpop.f32.mrf.mxu0  ;;  %v1082_v10 = vpop.f32.mrf.mxu1 }
 0x125   :  { %777 = vst.msk [vmem:[%s1587_s3 + $0x3c] sm:$0xf] %vm761_vm1, %v913_v5  ;;  %v531_v11 = vmax.f32 %v382_v6, 0.0  ;;  %803 = vst.msk [vmem:[%s1587_s3 + $0xa4] sm:$0xf] %vm761_vm1, %v939_v7  ;;  %v557_v12 = vmax.f32 %v486_v8, 0.0 }
 0x126   :  { %v384_v13 = vpop.f32.mrf.mxu0  ;;  %v488_v14 = vpop.f32.mrf.mxu1 }
 0x127   :  { %v914_v15 = vpack.c.bf16 %v531_v11, %v531_v11  ;;  %v385_v16 = vadd.f32 %v1337_v34, %v384_v13  ;;  %v940_v17 = vpack.c.bf16 %v557_v12, %v557_v12  ;;  %v489_v18 = vadd.f32 %v1337_v34, %v488_v14 }
 0x128   :  { %v1031_v19 = vpop.f32.mrf.mxu0  ;;  %v1083_v20 = vpop.f32.mrf.mxu1 }
 0x129   :  { %778 = vst.msk [vmem:[%s1587_s3 + $0x40] sm:$0xf] %vm761_vm1, %v914_v15  ;;  %v532_v21 = vmax.f32 %v385_v16, 0.0  ;;  %804 = vst.msk [vmem:[%s1587_s3 + $0xa8] sm:$0xf] %vm761_vm1, %v940_v17  ;;  %v558_v22 = vmax.f32 %v489_v18, 0.0 }
 0x12a   :  { %v389_v23 = vpop.f32.mrf.mxu0  ;;  %v493_v24 = vpop.f32.mrf.mxu1 }
 0x12b   :  { %v915_v25 = vpack.c.bf16 %v532_v21, %v532_v21  ;;  %v390_v26 = vadd.f32 %v1337_v34, %v389_v23  ;;  %v941_v27 = vpack.c.bf16 %v558_v22, %v558_v22  ;;  %v494_v28 = vadd.f32 %v1337_v34, %v493_v24 }
 0x12c   :  { %v1034_v29 = vpop.f32.mrf.mxu0  ;;  %v1086_v30 = vpop.f32.mrf.mxu1 }
 0x12d   :  { %779 = vst.msk [vmem:[%s1587_s3 + $0x44] sm:$0xf] %vm761_vm1, %v915_v25  ;;  %v533_v31 = vmax.f32 %v390_v26, 0.0  ;;  %805 = vst.msk [vmem:[%s1587_s3 + $0xac] sm:$0xf] %vm761_vm1, %v941_v27  ;;  %v559_v32 = vmax.f32 %v494_v28, 0.0 }
 0x12e   :  { %v392_v33 = vpop.f32.mrf.mxu0  ;;  %v496_v35 = vpop.f32.mrf.mxu1 }
 0x12f   :  { %v916_v36 = vpack.c.bf16 %v533_v31, %v533_v31  ;;  %v393_v37 = vadd.f32 %v1337_v34, %v392_v33  ;;  %v942_v38 = vpack.c.bf16 %v559_v32, %v559_v32  ;;  %v497_v39 = vadd.f32 %v1337_v34, %v496_v35 }
 0x130   :  { %v1035_v40 = vpop.f32.mrf.mxu0  ;;  %v1087_v41 = vpop.f32.mrf.mxu1 }
 0x131   :  { %780 = vst.msk [vmem:[%s1587_s3 + $0x48] sm:$0xf] %vm761_vm1, %v916_v36  ;;  %v534_v42 = vmax.f32 %v393_v37, 0.0  ;;  %806 = vst.msk [vmem:[%s1587_s3 + $0xb0] sm:$0xf] %vm761_vm1, %v942_v38  ;;  %v560_v43 = vmax.f32 %v497_v39, 0.0 }
 0x132   :  { %v397_v44 = vpop.f32.mrf.mxu0  ;;  %v501_v45 = vpop.f32.mrf.mxu1 }
 0x133   :  { %v917_v46 = vpack.c.bf16 %v534_v42, %v534_v42  ;;  %v398_v47 = vadd.f32 %v1337_v34, %v397_v44  ;;  %v943_v48 = vpack.c.bf16 %v560_v43, %v560_v43  ;;  %v502_v49 = vadd.f32 %v1337_v34, %v501_v45 }
 0x134   :  { %v1038_v50 = vpop.f32.mrf.mxu0  ;;  %v1090_v51 = vpop.f32.mrf.mxu1 }
 0x135   :  { %781 = vst.msk [vmem:[%s1587_s3 + $0x4c] sm:$0xf] %vm761_vm1, %v917_v46  ;;  %v535_v52 = vmax.f32 %v398_v47, 0.0  ;;  %807 = vst.msk [vmem:[%s1587_s3 + $0xb4] sm:$0xf] %vm761_vm1, %v943_v48  ;;  %v561_v53 = vmax.f32 %v502_v49, 0.0 }
 0x136   :  { %v400_v54 = vpop.f32.mrf.mxu0  ;;  %v504_v55 = vpop.f32.mrf.mxu1 }
 0x137   :  { %v918_v56 = vpack.c.bf16 %v535_v52, %v535_v52  ;;  %v401_v57 = vadd.f32 %v1337_v34, %v400_v54  ;;  %v944_v58 = vpack.c.bf16 %v561_v53, %v561_v53  ;;  %v505_v59 = vadd.f32 %v1337_v34, %v504_v55 }
 0x138   :  { %v1039_v60 = vpop.f32.mrf.mxu0  ;;  %v1091_v61 = vpop.f32.mrf.mxu1 }
 0x139   :  { %782 = vst.msk [vmem:[%s1587_s3 + $0x50] sm:$0xf] %vm761_vm1, %v918_v56  ;;  %v536_v62 = vmax.f32 %v401_v57, 0.0  ;;  %808 = vst.msk [vmem:[%s1587_s3 + $0xb8] sm:$0xf] %vm761_vm1, %v944_v58  ;;  %v562_v63 = vmax.f32 %v505_v59, 0.0 }
 0x13a   :  { %v405_v0 = vpop.f32.mrf.mxu0  ;;  %v509_v1 = vpop.f32.mrf.mxu1 }
 0x13b   :  { %v919_v2 = vpack.c.bf16 %v536_v62, %v536_v62  ;;  %v406_v3 = vadd.f32 %v1337_v34, %v405_v0  ;;  %v945_v4 = vpack.c.bf16 %v562_v63, %v562_v63  ;;  %v510_v5 = vadd.f32 %v1337_v34, %v509_v1 }
 0x13c   :  { %v1042_v6 = vpop.f32.mrf.mxu0  ;;  %v1094_v7 = vpop.f32.mrf.mxu1 }
 0x13d   :  { %783 = vst.msk [vmem:[%s1587_s3 + $0x54] sm:$0xf] %vm761_vm1, %v919_v2  ;;  %v537_v8 = vmax.f32 %v406_v3, 0.0  ;;  %809 = vst.msk [vmem:[%s1587_s3 + $0xbc] sm:$0xf] %vm761_vm1, %v945_v4  ;;  %v563_v9 = vmax.f32 %v510_v5, 0.0 }
 0x13e   :  { %v408_v10 = vpop.f32.mrf.mxu0  ;;  %v512_v11 = vpop.f32.mrf.mxu1 }
 0x13f   :  { %v920_v12 = vpack.c.bf16 %v537_v8, %v537_v8  ;;  %v409_v13 = vadd.f32 %v1337_v34, %v408_v10  ;;  %v946_v14 = vpack.c.bf16 %v563_v9, %v563_v9 }
 0x140   :  { %v1043_v15 = vpop.f32.mrf.mxu0  ;;  %v1095_v16 = vpop.f32.mrf.mxu1 }
 0x141   :  { %784 = vst.msk [vmem:[%s1587_s3 + $0x58] sm:$0xf] %vm761_vm1, %v920_v12  ;;  %v538_v17 = vmax.f32 %v409_v13, 0.0  ;;  %810 = vst.msk [vmem:[%s1587_s3 + $0xc0] sm:$0xf] %vm761_vm1, %v946_v14 }
 0x142   :  { %v413_v18 = vpop.f32.mrf.mxu0 }
 0x143   :  { %v921_v19 = vpack.c.bf16 %v538_v17, %v538_v17  ;;  %v414_v20 = vadd.f32 %v1337_v34, %v413_v18 }
 0x144   :  { %v1046_v21 = vpop.f32.mrf.mxu0 }
 0x145   :  { %785 = vst.msk [vmem:[%s1587_s3 + $0x5c] sm:$0xf] %vm761_vm1, %v921_v19  ;;  %v539_v22 = vmax.f32 %v414_v20, 0.0 }
 0x146   :  { %v416_v23 = vpop.f32.mrf.mxu0 }
 0x147   :  { %v922_v24 = vpack.c.bf16 %v539_v22, %v539_v22  ;;  %v417_v25 = vadd.f32 %v1337_v34, %v416_v23 }
 0x148   :  { %v1047_v26 = vpop.f32.mrf.mxu0 }
 0x149   :  { %786 = vst.msk [vmem:[%s1587_s3 + $0x60] sm:$0xf] %vm761_vm1, %v922_v24  ;;  %v540_v27 = vmax.f32 %v417_v25, 0.0 }
 0x14b   :  { %v923_v28 = vpack.c.bf16 %v540_v27, %v540_v27 }
 0x14d   :  { %787 = vst.msk [vmem:[%s1587_s3 + $0x64] sm:$0xf] %vm761_vm1, %v923_v28 }

// kernel: dqn_forward.4
= control target key start
LH: loop header
LB: loop body
LE: loop exit
PB: predicated region body
PF: predicated region fallthrough
CT: control target
= control target key end

     0   :  { %v644_v0 = vmov 0   ;;  %vm306_vm0 = vcmask 130048   ;;  %vm483_vm1 = vcmask 257024   ;;  %vm490_vm2 = vcmask 253952   ;;  %s834_s1 = inlined_call_operand.vmem [shape: bf16[400,32], index: 1, kind: input, shape index: {}]   ;;  %s835_s0 = inlined_call_operand.vmem [shape: bf16[50,400], index: 0, kind: input, shape index: {}]   ;;  %s836_s2 = inlined_call_operand.vmem [shape: f32[1,32], index: 2, kind: input, shape index: {}]   ;;  %s837_s3 = inlined_call_operand.vmem [shape: bf16[50,32], index: 3, kind: output, shape index: {}]  }
   0x1   :  { %383 = vmatprep.subr.bf16.mxu1 %v644_v0  ;;  %v597_v1 = vld [vmem:[%s834_s1 + $0x78] sm:$0xff]   ;;  %v600_v4 = vld [vmem:[%s834_s1 + $0x70] sm:$0xff]   ;;  %v603_v7 = vld [vmem:[%s834_s1 + $0x68] sm:$0xff]  }
   0x2   :  { %v598_v2 = vld [vmem:[%s834_s1 + $0xb8] sm:$0xff]   ;;  %556 = vmatprep.subr.bf16.mxu0 %v597_v1  ;;  %v601_v5 = vld [vmem:[%s834_s1 + $0xb0] sm:$0xff]   ;;  %v604_v8 = vld [vmem:[%s834_s1 + $0xa8] sm:$0xff]  }
   0x3   :  { %v599_v3 = vld [vmem:[%s834_s1 + $0x38] sm:$0xff]   ;;  %384 = vmatpush1.bf16.msra.mxu1 %v598_v2  ;;  %v602_v6 = vld [vmem:[%s834_s1 + $0x30] sm:$0xff]   ;;  %v605_v9 = vld [vmem:[%s834_s1 + $0x28] sm:$0xff]  }
   0x4   :  { %557 = vmatpush3.bf16.msra.mxu0 %v599_v3  ;;  %385 = vmatprep.subr.bf16.mxu1 %v644_v0  ;;  %v606_v10 = vld [vmem:[%s834_s1 + $0x60] sm:$0xff]   ;;  %v609_v13 = vld [vmem:[%s834_s1 + $0x58] sm:$0xff]   ;;  %v612_v16 = vld [vmem:[%s834_s1 + $0x50] sm:$0xff]  }
   0x5   :  { %558 = vmatprep.subr.bf16.mxu0 %v600_v4  ;;  %v607_v11 = vld [vmem:[%s834_s1 + $0xa0] sm:$0xff]   ;;  %v610_v14 = vld [vmem:[%s834_s1 + $0x98] sm:$0xff]   ;;  %v613_v17 = vld [vmem:[%s834_s1 + $0x90] sm:$0xff]  }
   0x6   :  { %v608_v12 = vld [vmem:[%s834_s1 + $0x20] sm:$0xff]   ;;  %v611_v15 = vld [vmem:[%s834_s1 + $0x18] sm:$0xff]   ;;  %v614_v18 = vld [vmem:[%s834_s1 + $0x10] sm:$0xff]  }
   0x7   :  { %386 = vmatpush1.bf16.msra.mxu1 %v601_v5  ;;  %v615_v19 = vld [vmem:[%s834_s1 + $0x48] sm:$0xff]   ;;  %v618_v22 = vld [vmem:[%s834_s1 + $0x40] sm:$0xff]  }
   0x8   :  { %559 = vmatpush3.bf16.msra.mxu0 %v602_v6  ;;  %387 = vmatprep.subr.bf16.mxu1 %v644_v0  ;;  %v616_v20 = vld [vmem:[%s834_s1 + $0x88] sm:$0xff]   ;;  %v623_v23 = vld [vmem:[%s835_s0 + $0x4] ss:$16 sps:$4 sm:$0xff]   ;;  %v621_v27 = vld [vmem:[%s835_s0] ss:$16 sps:$4 sm:$0xff]  }
   0x9   :  { %560 = vmatprep.subr.bf16.mxu0 %v603_v7  ;;  %v617_v21 = vld [vmem:[%s834_s1 + $0x8] sm:$0xff]   ;;  %v619_v24 = vld [vmem:[%s834_s1 + $0x80] sm:$0xff]   ;;  %351 = vmatprep.mubr.bf16.mxu0 %v623_v23 }
   0xa   :  { %v627_v25 = vld [vmem:[%s835_s0 + $0xc] ss:$16 sps:$4 sm:$0xff]   ;;  %v620_v26 = vld [vmem:[%s834_s1] sm:$0xff]   ;;  %v625_v30 = vld [vmem:[%s835_s0 + $0x8] ss:$16 sps:$4 sm:$0xff]  }
   0xb   :  { %388 = vmatpush1.bf16.msra.mxu1 %v604_v8  ;;  %538 = vmatprep.mubr.msk.bf16.mxu1 %vm306_vm0, %v627_v25  ;;  %v624_v28 = vld [vmem:[%s834_s1 + $0xc0] sm:$0xff]   ;;  %v631_v31 = vld [vmem:[%s835_s0 + $0x2c] ss:$16 sps:$4 sm:$0xff]   ;;  %v633_v34 = vld [vmem:[%s835_s0 + $0x28] ss:$16 sps:$4 sm:$0xff]  }
   0xc   :  { %561 = vmatpush3.bf16.msra.mxu0 %v605_v9  ;;  %389 = vmatprep.subr.bf16.mxu1 %v644_v0  ;;  %v628_v29 = vld [vmem:[%s835_s0 + $0x24] ss:$16 sps:$4 sm:$0xff]   ;;  %v630_v32 = vld [vmem:[%s835_s0 + $0x20] ss:$16 sps:$4 sm:$0xff]   ;;  %v637_v35 = vld [vmem:[%s835_s0 + $0x4c] ss:$16 sps:$4 sm:$0xff]  }
   0xd   :  { %562 = vmatprep.subr.bf16.mxu0 %v606_v10  ;;  %v634_v33 = vld [vmem:[%s835_s0 + $0x44] ss:$16 sps:$4 sm:$0xff]   ;;  %v636_v37 = vld [vmem:[%s835_s0 + $0x40] ss:$16 sps:$4 sm:$0xff]   ;;  %v28_v39 = vld [vmem:[%s835_s0 + $0x68] sm:$0x11] }
   0xe   :  { %v27_v36 = vld [vmem:[%s835_s0 + $0x60] sm:$0x11]  ;;  %v639_v40 = vld [vmem:[%s835_s0 + $0x48] ss:$16 sps:$4 sm:$0xff]   ;;  %v512_v41 = vcombine.high %v28_v39, %v28_v39  ;;  %v511_v43 = vcombine.low %v28_v39, %v28_v39 }
   0xf   :  { %390 = vmatpush1.bf16.msra.mxu1 %v607_v11  ;;  %v510_v38 = vcombine.high %v27_v36, %v27_v36  ;;  %v509_v42 = vcombine.low %v27_v36, %v27_v36  ;;  %v798_v46 = vld [vmem:[%s836_s2] ss:$0 sm:$0xff] }
  0x10   :  { %563 = vmatpush3.bf16.msra.mxu0 %v608_v12  ;;  %391 = vmatprep.subr.bf16.mxu1 %v644_v0 }
  0x11   :  { %564 = vmatprep.subr.bf16.mxu0 %v609_v13 }
  0x13   :  { %392 = vmatpush1.bf16.msra.mxu1 %v610_v14 }
  0x14   :  { %565 = vmatpush3.bf16.msra.mxu0 %v611_v15  ;;  %393 = vmatprep.subr.bf16.mxu1 %v644_v0 }
  0x15   :  { %566 = vmatprep.subr.bf16.mxu0 %v612_v16 }
  0x17   :  { %394 = vmatpush1.bf16.msra.mxu1 %v613_v17 }
  0x18   :  { %567 = vmatpush3.bf16.msra.mxu0 %v614_v18  ;;  %395 = vmatprep.subr.bf16.mxu1 %v644_v0 }
  0x19   :  { %568 = vmatprep.subr.bf16.mxu0 %v615_v19 }
  0x1b   :  { %396 = vmatpush1.bf16.msra.mxu1 %v616_v20 }
  0x1c   :  { %569 = vmatpush3.bf16.msra.mxu0 %v617_v21  ;;  %397 = vmatprep.subr.bf16.mxu1 %v644_v0 }
  0x1d   :  { %570 = vmatprep.subr.bf16.mxu0 %v618_v22 }
  0x1f   :  { %398 = vmatpush1.bf16.msra.mxu1 %v619_v24 }
  0x20   :  { %571 = vmatpush3.bf16.msra.mxu0 %v620_v26  ;;  %413 = vmatprep.subr.bf16.mxu1 %v644_v0 }
  0x23   :  { %352 = vmatmul.mubr.bf16.vlgmr.msra.gmra.mxu0 %v621_v27  ;;  %414 = vmatpush2.bf16.msra.mxu1 %v624_v28 }
  0x24   :  { %359 = vmatprep.mubr.bf16.mxu0 %v628_v29 }
  0x26   :  { %416 = vmatmul.mubr.bf16.vlgmr.msra.gmra.mxu1 %v625_v30 }
  0x27   :  { %539 = vmatprep.mubr.msk.bf16.mxu1 %vm306_vm0, %v631_v31 }
  0x2b   :  { %360 = vmatmul.mubr.bf16.gmra.mxu0 %v630_v32 }
  0x2c   :  { %367 = vmatprep.mubr.bf16.mxu0 %v634_v33 }
  0x2e   :  { %424 = vmatmul.mubr.bf16.gmra.mxu1 %v633_v34 }
  0x2f   :  { %540 = vmatprep.mubr.msk.bf16.mxu1 %vm306_vm0, %v637_v35 }
  0x33   :  { %368 = vmatmul.mubr.bf16.gmra.mxu0 %v636_v37 }
  0x34   :  { %375 = vmatprep.mubr.bf16.mxu0 %v510_v38 }
  0x36   :  { %432 = vmatmul.mubr.bf16.gmra.mxu1 %v639_v40 }
  0x37   :  { %541 = vmatprep.mubr.msk.bf16.mxu1 %vm306_vm0, %v512_v41 }
  0x3b   :  { %376 = vmatmul.mubr.bf16.gmra.mxu0 %v509_v42 }
  0x3e   :  { %440 = vmatmul.mubr.bf16.gmra.mxu1 %v511_v43 }
  0xe3   :  { %v572_v44 = vpop.f32.mrf.mxu0 }
  0xe5   :  { %v573_v45 = vpop.f32.mrf.mxu0 }
  0xe6   :  { %v574_v47 = vadd.f32 %v573_v45, %v572_v44  ;;  %v417_v48 = vpop.f32.mrf.mxu1 }
  0xe7   :  { %v575_v49 = vpop.f32.mrf.mxu0 }
  0xe8   :  { %v354_v50 = vadd.f32 %v574_v47, %v798_v46  ;;  %v419_v51 = vpop.f32.mrf.mxu1 }
  0xe9   :  { %v576_v52 = vpop.f32.mrf.mxu0 }
  0xea   :  { %v418_v53 = vadd.f32 %v417_v48, %v354_v50  ;;  %v577_v54 = vadd.f32 %v576_v52, %v575_v49  ;;  %v420_v55 = vpop.f32.mrf.mxu1 }
  0xeb   :  { %v578_v56 = vpop.f32.mrf.mxu0 }
  0xec   :  { %v447_v57 = vmax.f32 %v418_v53, 0.0  ;;  %v357_v58 = vadd.f32 %v577_v54, %v798_v46  ;;  %v422_v59 = vpop.f32.mrf.mxu1 }
  0xed   :  { %v579_v60 = vpop.f32.mrf.mxu0 }
  0xee   :  { %v549_v61 = vpack.c.bf16 %v447_v57, %v447_v57  ;;  %v421_v62 = vadd.f32 %v420_v55, %v357_v58  ;;  %v580_v63 = vadd.f32 %v579_v60, %v578_v56  ;;  %v425_v0 = vpop.f32.mrf.mxu1 }
  0xef   :  { %v581_v1 = vpop.f32.mrf.mxu0 }
  0xf0   :  { %484 = vst.msk [vmem:[%s837_s3] sm:$0xf] %vm483_vm1, %v549_v61  ;;  %v448_v2 = vmax.f32 %v421_v62, 0.0  ;;  %v362_v3 = vadd.f32 %v580_v63, %v798_v46  ;;  %v427_v4 = vpop.f32.mrf.mxu1 }
  0xf1   :  { %v582_v5 = vpop.f32.mrf.mxu0 }
  0xf2   :  { %v550_v6 = vpack.c.bf16 %v448_v2, %v448_v2  ;;  %v426_v7 = vadd.f32 %v425_v0, %v362_v3  ;;  %v583_v8 = vadd.f32 %v582_v5, %v581_v1  ;;  %v428_v9 = vpop.f32.mrf.mxu1 }
  0xf3   :  { %v584_v10 = vpop.f32.mrf.mxu0 }
  0xf4   :  { %485 = vst.msk [vmem:[%s837_s3 + $0x4] sm:$0xf] %vm483_vm1, %v550_v6  ;;  %v449_v11 = vmax.f32 %v426_v7, 0.0  ;;  %v365_v12 = vadd.f32 %v583_v8, %v798_v46  ;;  %v430_v13 = vpop.f32.mrf.mxu1 }
  0xf5   :  { %v585_v14 = vpop.f32.mrf.mxu0 }
  0xf6   :  { %v551_v15 = vpack.c.bf16 %v449_v11, %v449_v11  ;;  %v429_v16 = vadd.f32 %v428_v9, %v365_v12  ;;  %v586_v17 = vadd.f32 %v585_v14, %v584_v10  ;;  %v433_v18 = vpop.f32.mrf.mxu1 }
  0xf7   :  { %v587_v19 = vpop.f32.mrf.mxu0 }
  0xf8   :  { %486 = vst.msk [vmem:[%s837_s3 + $0x8] sm:$0xf] %vm483_vm1, %v551_v15  ;;  %v450_v20 = vmax.f32 %v429_v16, 0.0  ;;  %v370_v21 = vadd.f32 %v586_v17, %v798_v46  ;;  %v435_v22 = vpop.f32.mrf.mxu1 }
  0xf9   :  { %v588_v23 = vpop.f32.mrf.mxu0 }
  0xfa   :  { %v552_v24 = vpack.c.bf16 %v450_v20, %v450_v20  ;;  %v434_v25 = vadd.f32 %v433_v18, %v370_v21  ;;  %v589_v26 = vadd.f32 %v588_v23, %v587_v19  ;;  %v436_v27 = vpop.f32.mrf.mxu1 }
  0xfb   :  { %v590_v28 = vpop.f32.mrf.mxu0 }
  0xfc   :  { %487 = vst.msk [vmem:[%s837_s3 + $0xc] sm:$0xf] %vm483_vm1, %v552_v24  ;;  %v451_v29 = vmax.f32 %v434_v25, 0.0  ;;  %v373_v30 = vadd.f32 %v589_v26, %v798_v46  ;;  %v438_v31 = vpop.f32.mrf.mxu1 }
  0xfd   :  { %v591_v32 = vpop.f32.mrf.mxu0 }
  0xfe   :  { %v553_v33 = vpack.c.bf16 %v451_v29, %v451_v29  ;;  %v437_v34 = vadd.f32 %v436_v27, %v373_v30  ;;  %v592_v35 = vadd.f32 %v591_v32, %v590_v28  ;;  %v441_v36 = vpop.f32.mrf.mxu1 }
  0xff   :  { %v593_v37 = vpop.f32.mrf.mxu0 }
 0x100   :  { %488 = vst.msk [vmem:[%s837_s3 + $0x10] sm:$0xf] %vm483_vm1, %v553_v33  ;;  %v452_v38 = vmax.f32 %v437_v34, 0.0  ;;  %v378_v39 = vadd.f32 %v592_v35, %v798_v46  ;;  %v443_v40 = vpop.f32.mrf.mxu1 }
 0x101   :  { %v594_v41 = vpop.f32.mrf.mxu0 }
 0x102   :  { %v554_v42 = vpack.c.bf16 %v452_v38, %v452_v38  ;;  %v442_v43 = vadd.f32 %v441_v36, %v378_v39  ;;  %v444_v44 = vpop.f32.mrf.mxu1 }
 0x104   :  { %489 = vst.msk [vmem:[%s837_s3 + $0x14] sm:$0xf] %vm483_vm1, %v554_v42  ;;  %v453_v45 = vmax.f32 %v442_v43, 0.0  ;;  %v445_v47 = vpop.f32.mrf.mxu1 }
 0x106   :  { %v555_v48 = vpack.c.bf16 %v453_v45, %v453_v45 }
 0x108   :  { %491 = vst.msk [vmem:[%s837_s3 + $0x18] sm:$0x1] %vm490_vm2, %v555_v48 }

// kernel: dqn_forward.5
= control target key start
LH: loop header
LB: loop body
LE: loop exit
PB: predicated region body
PF: predicated region fallthrough
CT: control target
= control target key end

     0   :  { %v137_v29 = vlaneseq  ;;  %v1043_v34 = vmov 1966171168   ;;  %v1044_v42 = vmov 0.0   ;;  %vm244_vm0 = vcmask 1041409   ;;  %s1275_s0 = inlined_call_operand.vmem [shape: bf16[2,1,800], index: 0, kind: input, shape index: {}]   ;;  %s1276_s1 = inlined_call_operand.vmem [shape: bf16[800,32], index: 1, kind: input, shape index: {}]   ;;  %s1277_s2 = inlined_call_operand.vmem [shape: f32[1,32], index: 2, kind: input, shape index: {}]   ;;  %s1278_s3 = inlined_call_operand.vmem [shape: bf16[1,32,2], index: 3, kind: input, shape index: {}]   ;;  %s1279_s4 = inlined_call_operand.vmem [shape: f32[1,2], index: 4, kind: input, shape index: {}]   ;;  %s1280_s5 = inlined_call_operand.hbm [shape: f32[2,2], index: 5, kind: output, shape index: {}]  }
   0x1   :  { %v967_v0 = vld [vmem:[%s1276_s1 + $0x78] sm:$0xff]   ;;  %v971_v4 = vld [vmem:[%s1276_s1 + $0x70] sm:$0xff]   ;;  %v975_v8 = vld [vmem:[%s1276_s1 + $0x68] sm:$0xff]   ;;  %v135_v35 = vunpack.c.l.s4 %v1043_v34 }
   0x2   :  { %v968_v1 = vld [vmem:[%s1276_s1 + $0x38] sm:$0xff]   ;;  %875 = vmatprep.subr.bf16.mxu0 %v967_v0  ;;  %v972_v5 = vld [vmem:[%s1276_s1 + $0x30] sm:$0xff]   ;;  %v976_v9 = vld [vmem:[%s1276_s1 + $0x28] sm:$0xff]   ;;  %v138_v36 = vshrl.u32 %v137_v29, 7 }
   0x3   :  { %v969_v2 = vld [vmem:[%s1276_s1 + $0xf8] sm:$0xff]   ;;  %876 = vmatpush3.bf16.msra.mxu0 %v968_v1  ;;  %v973_v6 = vld [vmem:[%s1276_s1 + $0xf0] sm:$0xff]   ;;  %v977_v10 = vld [vmem:[%s1276_s1 + $0xe8] sm:$0xff]   ;;  %v136_v40 = vunpack.c.0.s8 %v135_v35 }
   0x4   :  { %v970_v3 = vld [vmem:[%s1276_s1 + $0xb8] sm:$0xff]   ;;  %897 = vmatprep.subr.bf16.mxu1 %v969_v2  ;;  %877 = vmatprep.subr.bf16.mxu0 %v971_v4  ;;  %v974_v7 = vld [vmem:[%s1276_s1 + $0xb0] sm:$0xff]   ;;  %v978_v11 = vld [vmem:[%s1276_s1 + $0xa8] sm:$0xff]  }
   0x5   :  { %898 = vmatpush3.bf16.msra.mxu1 %v970_v3  ;;  %v979_v12 = vld [vmem:[%s1276_s1 + $0x60] sm:$0xff]   ;;  %v983_v16 = vld [vmem:[%s1276_s1 + $0x58] sm:$0xff]   ;;  %v987_v20 = vld [vmem:[%s1276_s1 + $0x50] sm:$0xff]   ;;  %v139_v43 = vsub.s32 %v136_v40, %v138_v36 }
   0x6   :  { %899 = vmatprep.subr.bf16.mxu1 %v973_v6  ;;  %v980_v13 = vld [vmem:[%s1276_s1 + $0x20] sm:$0xff]   ;;  %v984_v17 = vld [vmem:[%s1276_s1 + $0x18] sm:$0xff]   ;;  %v988_v21 = vld [vmem:[%s1276_s1 + $0x10] sm:$0xff]  }
   0x7   :  { %878 = vmatpush3.bf16.msra.mxu0 %v972_v5  ;;  %v981_v14 = vld [vmem:[%s1276_s1 + $0xe0] sm:$0xff]   ;;  %v985_v18 = vld [vmem:[%s1276_s1 + $0xd8] sm:$0xff]   ;;  %v989_v22 = vld [vmem:[%s1276_s1 + $0xd0] sm:$0xff]  }
   0x8   :  { %879 = vmatprep.subr.bf16.mxu0 %v975_v8  ;;  %v982_v15 = vld [vmem:[%s1276_s1 + $0xa0] sm:$0xff]   ;;  %v986_v19 = vld [vmem:[%s1276_s1 + $0x98] sm:$0xff]   ;;  %v990_v23 = vld [vmem:[%s1276_s1 + $0x90] sm:$0xff]  }
   0x9   :  { %900 = vmatpush3.bf16.msra.mxu1 %v974_v7  ;;  %v991_v24 = vld [vmem:[%s1276_s1 + $0x48] sm:$0xff]   ;;  %v995_v28 = vld [vmem:[%s1276_s1 + $0x40] sm:$0xff]   ;;  %v1001_v38 = vld [vmem:[%s1276_s1 + $0x178] sm:$0xff]  }
   0xa   :  { %901 = vmatprep.subr.bf16.mxu1 %v977_v10  ;;  %v992_v25 = vld [vmem:[%s1276_s1 + $0x8] sm:$0xff]   ;;  %v996_v30 = vld [vmem:[%s1276_s1] sm:$0xff]  }
   0xb   :  { %880 = vmatpush3.bf16.msra.mxu0 %v976_v9  ;;  %v993_v26 = vld [vmem:[%s1276_s1 + $0xc8] sm:$0xff]   ;;  %v997_v31 = vld [vmem:[%s1276_s1 + $0xc0] sm:$0xff]  }
   0xc   :  { %881 = vmatprep.subr.bf16.mxu0 %v979_v12  ;;  %v994_v27 = vld [vmem:[%s1276_s1 + $0x88] sm:$0xff]   ;;  %v22_v32 = vld [vmem:[%s1275_s0] sm:$0x7f] }
   0xd   :  { %902 = vmatpush3.bf16.msra.mxu1 %v978_v11  ;;  %v23_v33 = vld [vmem:[%s1275_s0 + $0x7] sm:$0x7f]  ;;  %v133_v39 = vcombine.high %v22_v32, %v22_v32  ;;  %v140_v44 = vrot.slane %v22_v32, %v139_v43 }
   0xe   :  { %903 = vmatprep.subr.bf16.mxu1 %v981_v14  ;;  %v1000_v37 = vld [vmem:[%s1276_s1 + $0x80] sm:$0xff]   ;;  %v181_v41 = vcombine.high %v23_v33, %v23_v33  ;;  %v188_v45 = vrot.slane %v23_v33, %v139_v43  ;;  %v1004_v33 = vld [vmem:[%s1276_s1 + $0x130] sm:$0xff]  }
   0xf   :  { %882 = vmatpush3.bf16.msra.mxu0 %v980_v13  ;;  %v147_v46 = vrot.slane %v133_v39, %v139_v43  ;;  %v148_v48 = vcombine.high %v140_v44, %v140_v44  ;;  %v156_v50 = vrot.slane %v140_v44, %v139_v43 }
  0x10   :  { %883 = vmatprep.subr.bf16.mxu0 %v983_v16  ;;  %v195_v47 = vrot.slane %v181_v41, %v139_v43  ;;  %v196_v49 = vcombine.high %v188_v45, %v188_v45  ;;  %v204_v51 = vrot.slane %v188_v45, %v139_v43 }
  0x11   :  { %904 = vmatpush3.bf16.msra.mxu1 %v982_v15  ;;  %v149_v52 = vcombine.high %v147_v46, %v147_v46  ;;  %v1183_v54 = vrot.slane %v147_v46, %v139_v43  ;;  %v170_v56 = vrot.slane %v148_v48, %v139_v43  ;;  %v229_v58 = vunpack.c.l.b16 %v156_v50 }
  0x12   :  { %905 = vmatprep.subr.bf16.mxu1 %v985_v18  ;;  %v197_v53 = vcombine.high %v195_v47, %v195_v47  ;;  %v1185_v55 = vrot.slane %v195_v47, %v139_v43  ;;  %v218_v57 = vrot.slane %v196_v49, %v139_v43  ;;  %v236_v59 = vunpack.c.l.b16 %v204_v51 }
  0x13   :  { %884 = vmatpush3.bf16.msra.mxu0 %v984_v17  ;;  %v178_v60 = vcombine.high %v156_v50, %v156_v50  ;;  %v226_v61 = vcombine.high %v204_v51, %v204_v51  ;;  %v177_v62 = vrot.slane %v149_v52, %v139_v43  ;;  %v230_v0 = vunpack.c.l.b16 %v170_v56 }
  0x14   :  { %885 = vmatprep.subr.bf16.mxu0 %v987_v20  ;;  %v225_v63 = vrot.slane %v197_v53, %v139_v43  ;;  %v237_v1 = vunpack.c.l.b16 %v218_v57  ;;  %v243_v2 = vrot.slane %v236_v59, 7  ;;  %v180_v3 = vcombine.high %v170_v56, %v170_v56 }
  0x15   :  { %906 = vmatpush3.bf16.msra.mxu1 %v986_v19  ;;  %v228_v4 = vcombine.high %v218_v57, %v218_v57  ;;  %v231_v5 = vunpack.c.l.b16 %v178_v60  ;;  %v238_v6 = vunpack.c.l.b16 %v226_v61  ;;  %v234_v9 = vunpack.c.l.b16 %v177_v62 }
  0x16   :  { %907 = vmatprep.subr.bf16.mxu1 %v989_v22  ;;  %v246_v7 = vrot.slane %v237_v1, 7  ;;  %v245_v8 = vsel %vm244_vm0, %v243_v2, %v229_v58  ;;  %v241_v10 = vunpack.c.l.b16 %v225_v63  ;;  %v232_v12 = vunpack.c.l.b16 %v180_v3 }
  0x17   :  { %886 = vmatpush3.bf16.msra.mxu0 %v988_v21  ;;  %v258_v11 = vpack.c.b16 %v245_v8, %v245_v8  ;;  %v239_v13 = vunpack.c.l.b16 %v228_v4  ;;  %v248_v14 = vrot.slane %v238_v6, 7  ;;  %v179_v17 = vcombine.high %v1183_v54, %v1183_v54  ;;  %v1002_v21 = vld [vmem:[%s1276_s1 + $0x138] sm:$0xff]  }
  0x18   :  { %887 = vmatprep.subr.bf16.mxu0 %v991_v24  ;;  %v247_v15 = vsel %vm244_vm0, %v246_v7, %v230_v0  ;;  %v254_v16 = vrot.slane %v241_v10, 7  ;;  %v227_v18 = vcombine.high %v1185_v55, %v1185_v55 }
  0x19   :  { %908 = vmatpush3.bf16.msra.mxu1 %v990_v23  ;;  %v259_v19 = vpack.c.b16 %v247_v15, %v247_v15  ;;  %v250_v20 = vrot.slane %v239_v13, 7  ;;  %v249_v22 = vsel %vm244_vm0, %v248_v14, %v231_v5  ;;  %v1003_v23 = vld [vmem:[%s1276_s1 + $0x170] sm:$0xff]  }
  0x1a   :  { %909 = vmatprep.subr.bf16.mxu1 %v993_v26  ;;  %v255_v24 = vsel %vm244_vm0, %v254_v16, %v234_v9 }
  0x1b   :  { %888 = vmatpush3.bf16.msra.mxu0 %v992_v25  ;;  %v242_v25 = vunpack.c.l.b16 %v227_v18  ;;  %607 = vmatprep.mubr.bf16.mxu0 %v259_v19  ;;  %v251_v26 = vsel %vm244_vm0, %v250_v20, %v232_v12 }
  0x1c   :  { %889 = vmatprep.subr.bf16.mxu0 %v995_v28  ;;  %v263_v28 = vpack.c.b16 %v255_v24, %v255_v24  ;;  %v261_v29 = vpack.c.b16 %v251_v26, %v251_v26 }
  0x1d   :  { %910 = vmatpush3.bf16.msra.mxu1 %v994_v27  ;;  %v260_v27 = vpack.c.b16 %v249_v22, %v249_v22  ;;  %v256_v32 = vrot.slane %v242_v25, 7 }
  0x1e   :  { %911 = vmatprep.subr.bf16.mxu1 %v997_v31  ;;  %v235_v31 = vunpack.c.l.b16 %v179_v17 }
  0x1f   :  { %890 = vmatpush3.bf16.msra.mxu0 %v996_v30  ;;  %v1015_v30 = vld [vmem:[%s1276_s1 + $0x188] sm:$0xff]  }
  0x20   :  { %919 = vmatprep.subr.bf16.mxu0 %v1001_v38 }
  0x21   :  { %912 = vmatpush3.bf16.msra.mxu1 %v1000_v37 }
  0x22   :  { %947 = vmatprep.subr.bf16.mxu1 %v1044_v42  ;;  %608 = vmatmul.mubr.bf16.vlgmr.msra.gmra.mxu0 %v258_v11 }
  0x23   :  { %920 = vmatpush3.bf16.msra.mxu0 %v1002_v21  ;;  %687 = vmatprep.mubr.bf16.mxu0 %v263_v28 }
  0x24   :  { %10 = vsyncpa [#allocation3], 0  ;;  %647 = vmatprep.mubr.bf16.mxu1 %v261_v29  ;;  %921 = vmatprep.subr.bf16.mxu0 %v1003_v23  ;;  %v1005_v34 = vld [vmem:[%s1276_s1 + $0x168] sm:$0xff]   ;;  %v1018_v35 = vld [vmem:[%s1276_s1 + $0x180] sm:$0xff]   ;;  %vm1045_vm1 = vmmov 0   ;;  %v257_v36 = vsel %vm244_vm0, %v256_v32, %v235_v31  ;;  %vm571_vm2 = vcmask 261120   ;;  %v240_v46 = vunpack.c.l.b16 %v1185_v55 }
  0x25   :  { %648 = vmatmul.mubr.bf16.vlgmr.msra.gmra.mxu1 %v260_v27  ;;  %v1006_v37 = vld [vmem:[%s1276_s1 + $0x128] sm:$0xff]   ;;  %v1007_v38 = vld [vmem:[%s1276_s1 + $0x160] sm:$0xff]   ;;  %v264_v39 = vpack.c.b16 %v257_v36, %v257_v36  ;;  %v1009_v41 = vld [vmem:[%s1276_s1 + $0x158] sm:$0xff]   ;;  %v233_v49 = vunpack.c.l.b16 %v1183_v54  ;;  %s1046_s26 = smov [#allocation2]   ;;  %vm803_vm3 = vcmask 9216  }
  0x26   :  { %948 = vmatpush3.bf16.msra.mxu1 %v1015_v30  ;;  %951 = vmatprep.mubr.msk.bf16.mxu1 %vm1045_vm1, %v1044_v42  ;;  %v1008_v40 = vld [vmem:[%s1276_s1 + $0x120] sm:$0xff]   ;;  %v1010_v43 = vld [vmem:[%s1276_s1 + $0x118] sm:$0xff]   ;;  %v1011_v44 = vld [vmem:[%s1276_s1 + $0x150] sm:$0xff]   ;;  %v252_v50 = vrot.slane %v240_v46, 7 }
  0x27   :  { %922 = vmatpush3.bf16.msra.mxu0 %v1004_v33  ;;  %949 = vmatprep.subr.bf16.mxu1 %v1044_v42  ;;  %v1012_v45 = vld [vmem:[%s1276_s1 + $0x110] sm:$0xff]   ;;  %v1013_v47 = vld [vmem:[%s1276_s1 + $0x148] sm:$0xff]   ;;  %v1016_v51 = vld [vmem:[%s1276_s1 + $0x140] sm:$0xff]  }
  0x28   :  { %923 = vmatprep.subr.bf16.mxu0 %v1005_v34  ;;  %v1014_v48 = vld [vmem:[%s1276_s1 + $0x108] sm:$0xff]   ;;  %v1017_v52 = vld [vmem:[%s1276_s1 + $0x100] sm:$0xff]   ;;  %v253_v53 = vsel %vm244_vm0, %v252_v50, %v233_v49 }
  0x29   :  { %v262_v55 = vpack.c.b16 %v253_v53, %v253_v53  ;;  %v1019_v54 = vld [vmem:[%s1278_s3 + $0x8] sm:$0xff]   ;;  %v1020_v56 = vld [vmem:[%s1278_s3] sm:$0xff]  }
  0x2a   :  { %950 = vmatpush3.bf16.msra.mxu1 %v1018_v35  ;;  %v871_v18 = vld [vmem:[%s1279_s4] ss:$0 sm:$0xff] }
  0x2b   :  { %924 = vmatpush3.bf16.msra.mxu0 %v1006_v37  ;;  %955 = vmatprep.subr.bf16.mxu1 %v1044_v42 }
  0x2c   :  { %925 = vmatprep.subr.bf16.mxu0 %v1007_v38 }
  0x2d   :  { %952 = vmatmul.mubr.msk.bf16.vlgmr.msra.gmra.mxu1 %vm571_vm2, %v264_v39 }
  0x2e   :  { %959 = vmatprep.mubr.msk.bf16.mxu1 %vm1045_vm1, %v1044_v42  ;;  %956 = vmatpush3.bf16.msra.mxu1 %v1019_v54 }
  0x2f   :  { %926 = vmatpush3.bf16.msra.mxu0 %v1008_v40  ;;  %957 = vmatprep.subr.bf16.mxu1 %v1044_v42  ;;  %v819_v42 = vld [vmem:[%s1277_s2] ss:$0 sm:$0xff]  ;;  %s811_s2 = sshll.u32 %s1046_s26, 4  ;;  %s812_s2 = int_to_ptr.vmem [resolvable:$true] %s811_s2 }
  0x30   :  { %927 = vmatprep.subr.bf16.mxu0 %v1009_v41  ;;  %s1021_s27 = scalar_lea.vmem %s812_s2, 32  ;;  %p1026_p1 = scmp.lt.s32.totalorder %s812_s2, %s812_s2 }
  0x31   :  { %p1022_p0 = scmp.ne.s32.totalorder %s812_s2, %s1021_s27  ;;  %p1027_p2 = scmp.lt.s32.totalorder %s1021_s27, %s1021_s27 }
  0x32   :  { %958 = vmatpush3.bf16.msra.mxu1 %v1020_v56 }
  0x33   :  { %928 = vmatpush3.bf16.msra.mxu0 %v1010_v43  ;;  %p1028_p3 = por %p1027_p2, %p1026_p1 }
  0x34   :  { %929 = vmatprep.subr.bf16.mxu0 %v1011_v44 }
  0x35   :  { %p1029_p4 = pnand %p1028_p3, %p1022_p0 }
  0x37   :  { %930 = vmatpush3.bf16.msra.mxu0 %v1012_v45 }
  0x38   :  { %931 = vmatprep.subr.bf16.mxu0 %v1013_v47 }
  0x3b   :  { %932 = vmatpush3.bf16.msra.mxu0 %v1014_v48 }
  0x3c   :  { %933 = vmatprep.subr.bf16.mxu0 %v1016_v51 }
  0x3f   :  { %934 = vmatpush3.bf16.msra.mxu0 %v1017_v52 }
  0x42   :  { %688 = vmatmul.mubr.bf16.vlgmr.msra.gmra.mxu0 %v262_v55 }
  0xe2   :  { %v891_v57 = vpop.f32.mrf.mxu0 }
  0xe4   :  { %v892_v58 = vpop.f32.mrf.mxu0 }
  0xe5   :  { %v913_v59 = vpop.f32.mrf.mxu1  ;;  %v893_v5 = vadd.f32 %v892_v58, %v891_v57 }
  0xe6   :  { %v894_v60 = vpop.f32.mrf.mxu0 }
  0xe7   :  { %v914_v61 = vpop.f32.mrf.mxu1  ;;  %v610_v6 = vadd.f32 %v893_v5, %v819_v42 }
  0xe8   :  { %v895_v62 = vpop.f32.mrf.mxu0  ;;  %v915_v7 = vadd.f32 %v914_v61, %v913_v59 }
  0xe9   :  { %v916_v63 = vpop.f32.mrf.mxu1 }
  0xea   :  { %v650_v10 = vadd.f32 %v915_v7, %v610_v6 }
  0xeb   :  { %v917_v0 = vpop.f32.mrf.mxu1 }
  0xed   :  { %v729_v1 = vpop.f32.mrf.mxu1 }
  0xef   :  { %v953_v2 = vpop.f32.mrf.mxu1 }
  0xf1   :  { %v732_v3 = vpop.f32.mrf.mxu1 }
  0xf3   :  { %v954_v4 = vpop.f32.mrf.mxu1 }
 0x102   :  { %v935_v8 = vpop.f32.mrf.mxu0 }
 0x104   :  { %v936_v9 = vpop.f32.mrf.mxu0 }
 0x105   :  { %v937_v11 = vadd.f32 %v936_v9, %v935_v8 }
 0x106   :  { %v938_v12 = vpop.f32.mrf.mxu0 }
 0x107   :  { %v690_v13 = vadd.f32 %v937_v11, %v650_v10 }
 0x108   :  { %v939_v14 = vpop.f32.mrf.mxu0 }
 0x109   :  { %v730_v15 = vadd.f32 %v729_v1, %v690_v13 }
 0x10b   :  { %v735_v16 = vmax.f32 %v730_v15, 0.0 }
 0x10d   :  { %v736_v17 = vpack.c.bf16 %v735_v16, %v735_v16 }
 0x10f   :  { %960 = vmatmul.mubr.msk.bf16.vlgmr.msra.gmra.mxu1 %vm571_vm2, %v736_v17 }
 0x1cf   :  { %v797_v19 = vpop.f32.mrf.mxu1 }
 0x1d0   :  { %v798_v20 = vadd.f32 %v871_v18, %v797_v19 }
 0x1d1   :  { %v961_v21 = vpop.f32.mrf.mxu1 }
 0x1d2   :  { %804 = vst.msk [vmem:[#allocation2] sm:$0x3] %vm803_vm3, %v798_v20 }
 0x1d3   :  { %v800_v22 = vpop.f32.mrf.mxu1 }
 0x1d4   :  { %1032 = shalt.err (!%p1029_p4)
}
 0x1d5   :  { %814 = dma.vmem_to_hbm [thread:$0]  %s812_s2, 32, %s1280_s5, [#allocation3]   ;;  %v962_v23 = vpop.f32.mrf.mxu1 }
 0x1d6   :  { %1041 = dma.done.wait [#allocation3], 32  }
 0x1d7   :  { %1042 = vsyncadd [#allocation3], 4294967264 }
 0x1d8   :  { %818 = vsyncpa [#allocation3], 1 }

</bundles_post_ra>
